<compile_context>
chip_gen: v7x
topology: tpu7x:2x2x1
jax: 0.10.0
libtpu: 0.0.40
codegen_flags: <defaults>
</compile_context>

<pallas_src>
import jax
import jax.numpy as jnp
from jax.experimental import pallas as pl
from jax.experimental.pallas import tpu as pltpu

# ----------------------------- config -----------------------------
IMG = 32
PATCH = 16
IN_CH = 3
D = 64                      # embed dim
HEADS = 4
HEAD_DIM = D // HEADS
DEPTH = 2                   # transformer blocks
MLP_HIDDEN = 4 * D
NUM_CLASSES = 8
SEQ_LEN = 5
GRID_HW = IMG // PATCH
N_PATCH = GRID_HW * GRID_HW
N_TOK = N_PATCH + 1         # + cls token
N_ROW = 8                   # tokens padded to 8 rows/image (full sublane tile)
LN_EPS = 1e-6
PATCH_DIM = IN_CH * PATCH * PATCH
OUT_PAD = 128               # lane-dense padding for the fc output (logical = 40)
SCALE = float(HEAD_DIM) ** -0.5
VEC_W = 256                 # lane width of the packed per-block vector params


# ----------------------------- in-kernel helpers -----------------------------
def _layernorm(x, g, b):
    """f32 LayerNorm over the last axis; g/b are (1, D) and broadcast."""
    mu = jnp.mean(x, axis=-1, keepdims=True)
    var = jnp.mean(jnp.square(x - mu), axis=-1, keepdims=True)
    return (x - mu) * jax.lax.rsqrt(var + LN_EPS) * g + b


def _mxu(a_f32, w_bf16):
    """Activation cast to bf16 at the MXU input, bf16 weight, f32 accumulation."""
    return jnp.dot(a_f32.astype(jnp.bfloat16), w_bf16,
                   preferred_element_type=jnp.float32)


# ----------------------------- fused kernel -----------------------------
def _deit_kernel(patches_ref, patch_w_ref, misc_ref, vec_ref,
                 qkv_w_ref, proj_w_ref, fc1_w_ref, fc2_w_ref, fc_w_ref, o_ref):
    """Whole CaptchaDeiT forward for one batch tile (BT images) per grid step."""
    R = patches_ref.shape[1]          # BT * N_ROW stacked rows
    BT = R // N_ROW

    # ---- packed small parameters (single misc array, single per-block array) ----
    pos_full = misc_ref[0:N_ROW, 0:D]            # (8, D): cls+pos / pos+patch_b / 0
    norm_g = misc_ref[8:9, 0:D]
    norm_b = misc_ref[9:10, 0:D]
    fc_b = misc_ref[10:11, :]                    # (1, OUT_PAD)

    # -inf bias on pad keys (rows 5..7 of each image) for the attention softmax
    key_idx = jax.lax.broadcasted_iota(jnp.int32, (1, 1, N_ROW), 2)
    key_bias = jnp.where(key_idx >= N_TOK,
                         jnp.float32(-1e30), jnp.float32(0.0))

    # ---- patch embedding (conv k=s=p as matmul on the padded 8-row slabs) ----
    # rows 0 and 5..7 of each image are zero inputs; cls token / pos / patch bias
    # are all folded into pos_full, so token assembly is a single broadcast add.
    tok = _mxu(patches_ref[0], patch_w_ref[...])                   # (R, D) f32
    h = (tok.reshape(BT, N_ROW, D) + pos_full[None]).reshape(R, D)

    # ---- transformer blocks (statically unrolled) ----
    for d in range(DEPTH):
        ln1_g = vec_ref[d, 0:1, 0:D]
        ln1_b = vec_ref[d, 1:2, 0:D]
        qkv_b = vec_ref[d, 2:3, 0:3 * D]
        proj_b = vec_ref[d, 3:4, 0:D]
        ln2_g = vec_ref[d, 4:5, 0:D]
        ln2_b = vec_ref[d, 5:6, 0:D]
        fc1_b = vec_ref[d, 6:7, 0:MLP_HIDDEN]
        fc2_b = vec_ref[d, 7:8, 0:D]

        # --- attention sub-block: h = h + proj(MHSA(norm1(h))) ---
        y = _layernorm(h, ln1_g, ln1_b)
        qkv = _mxu(y, qkv_w_ref[d]) + qkv_b                        # (R, 3D) f32
        qkv3 = qkv.reshape(BT, N_ROW, 3 * D)

        attn_out = jnp.zeros((R, D), jnp.float32)
        for hd in range(HEADS):
            lo = hd * HEAD_DIM
            qh = qkv3[:, :, lo:lo + HEAD_DIM].astype(jnp.bfloat16)
            kh = qkv3[:, :, D + lo:D + lo + HEAD_DIM].astype(jnp.bfloat16)
            vh = qkv3[:, :, 2 * D + lo:2 * D + lo + HEAD_DIM].astype(jnp.bfloat16)
            s = jnp.einsum('bqd,bkd->bqk', qh, kh,
                           preferred_element_type=jnp.float32) * SCALE + key_bias
            s = s - jnp.max(s, axis=-1, keepdims=True)
            p = jnp.exp(s)
            p = p * pl.reciprocal(jnp.sum(p, axis=-1, keepdims=True), approx=True)
            oh = jnp.einsum('bqk,bkd->bqd', p.astype(jnp.bfloat16), vh,
                            preferred_element_type=jnp.float32)    # (BT, 8, HEAD_DIM)
            # fold the head concat into the output projection (8-aligned row slice)
            attn_out = attn_out + _mxu(oh.reshape(R, HEAD_DIM),
                                       proj_w_ref[d, lo:lo + HEAD_DIM, :])
        h = attn_out + proj_b + h

        # --- MLP sub-block: h = h + fc2(gelu(fc1(norm2(h)))) ---
        y = _layernorm(h, ln2_g, ln2_b)
        # TODO(synk): nn.GELU default is exact erf; tanh-approx GELU used because erf
        # lowering in Mosaic is not guaranteed (differs from reference at ~1e-3).
        y = jax.nn.gelu(_mxu(y, fc1_w_ref[d]) + fc1_b, approximate=True)
        h = _mxu(y, fc2_w_ref[d]) + fc2_b + h

    # ---- final norm + fc head on all rows (lane-dense store); wrapper picks the
    #      cls row (row 0 of each 8-row slab), so no in-kernel sublane gather. ----
    y = _layernorm(h, norm_g, norm_b)
    out = _mxu(y, fc_w_ref[...]) + fc_b                            # (R, OUT_PAD)
    o_ref[0] = out.astype(o_ref.dtype)


# ----------------------------- params -----------------------------
def init_params(key):
    keys = iter(jax.random.split(key, 64))

    def nrm(shape, std=0.02):
        return (std * jax.random.normal(next(keys), shape)).astype(jnp.float32)

    cls = nrm((D,))
    pos = nrm((N_TOK, D))
    patch_b = nrm((D,))
    fc_b_real = nrm((NUM_CLASSES * SEQ_LEN,))

    # misc (16, 128) f32: pos_full rows 0..7, norm gamma/beta rows 8/9, fc bias row 10
    misc = jnp.zeros((16, 128), jnp.float32)
    misc = misc.at[0, :D].set(cls + pos[0])                        # cls token + pos[0]
    misc = misc.at[1:1 + N_PATCH, :D].set(pos[1:] + patch_b)       # pos + conv bias
    misc = misc.at[8, :D].set(jnp.ones((D,), jnp.float32))         # final norm gamma
    misc = misc.at[9, :D].set(jnp.zeros((D,), jnp.float32))        # final norm beta
    misc = misc.at[10, :NUM_CLASSES * SEQ_LEN].set(fc_b_real)      # fc bias (padded)

    # per-block vector params packed as (DEPTH, 8, 256) f32
    vec = jnp.zeros((DEPTH, 8, VEC_W), jnp.float32)
    qkv_w, proj_w, fc1_w, fc2_w = [], [], [], []
    for d in range(DEPTH):
        vec = vec.at[d, 0, :D].set(jnp.ones((D,), jnp.float32))    # ln1 gamma
        vec = vec.at[d, 1, :D].set(jnp.zeros((D,), jnp.float32))   # ln1 beta
        vec = vec.at[d, 2, :3 * D].set(nrm((3 * D,)))              # qkv bias
        vec = vec.at[d, 3, :D].set(nrm((D,)))                      # proj bias
        vec = vec.at[d, 4, :D].set(jnp.ones((D,), jnp.float32))    # ln2 gamma
        vec = vec.at[d, 5, :D].set(jnp.zeros((D,), jnp.float32))   # ln2 beta
        vec = vec.at[d, 6, :MLP_HIDDEN].set(nrm((MLP_HIDDEN,)))    # fc1 bias
        vec = vec.at[d, 7, :D].set(nrm((D,)))                      # fc2 bias
        qkv_w.append(nrm((D, 3 * D)))
        proj_w.append(nrm((D, D)))
        fc1_w.append(nrm((D, MLP_HIDDEN)))
        fc2_w.append(nrm((MLP_HIDDEN, D)))

    # fc head pre-padded to OUT_PAD lanes (cols >= 40 are zero) for lane-dense store
    fc_w = jnp.zeros((D, OUT_PAD), jnp.float32)
    fc_w = fc_w.at[:, :NUM_CLASSES * SEQ_LEN].set(nrm((D, NUM_CLASSES * SEQ_LEN)))

    bf16 = jnp.bfloat16
    return {
        # bf16 weight storage: half the DMA/VMEM, native MXU feed (f32 accumulate)
        "patch_w": nrm((PATCH_DIM, D)).astype(bf16),   # conv (D,C,p,p) flat+T
        "qkv_w": jnp.stack(qkv_w).astype(bf16),        # (DEPTH, D, 3D)
        "proj_w": jnp.stack(proj_w).astype(bf16),      # (DEPTH, D, D)
        "fc1_w": jnp.stack(fc1_w).astype(bf16),        # (DEPTH, D, MLP)
        "fc2_w": jnp.stack(fc2_w).astype(bf16),        # (DEPTH, MLP, D)
        "fc_w": fc_w.astype(bf16),                     # (D, OUT_PAD)
        # f32 packed small params
        "misc": misc,                                  # (16, 128)
        "blk_vec": vec,                                # (DEPTH, 8, 256)
    }


# ----------------------------- wrapper -----------------------------
def _rep_spec(arr):
    """Full-array block, same block index every grid step (weights fetched once)."""
    zeros = (0,) * arr.ndim
    return pl.BlockSpec(arr.shape, lambda g, zeros=zeros: zeros)


def extract_patches(x):
    """NCHW image -> (B, N_PATCH, C*P*P), same order as Conv2d(k=p, s=p).flatten(2).T."""
    B = x.shape[0]
    x = x.reshape(B, IN_CH, GRID_HW, PATCH, GRID_HW, PATCH)
    x = x.transpose(0, 2, 4, 1, 3, 5)            # (B, gh, gw, C, p, p)
    return x.reshape(B, N_PATCH, PATCH_DIM)


def captcha_deit_forward(params, x, num_steps=None):
    B = x.shape[0]
    # Keep >=2 parallel grid steps so both v7x TensorCores get work; on v5e/v6e
    # this is still at most 2 cheap sequential steps. Each step handles BT images.
    G = min(B, 2) if num_steps is None else max(1, min(num_steps, B))
    BT = -(-B // G)
    Bpad = G * BT

    # (Bpad, 8, PATCH_DIM): row 0 (cls slot) and rows 5..7 are zero pad rows, so
    # the kernel's patch matmul + pos_full add assembles tokens with no concat.
    patches = extract_patches(x.astype(jnp.float32))
    pp = jnp.zeros((Bpad, N_ROW, PATCH_DIM), jnp.float32)
    pp = pp.at[:B, 1:1 + N_PATCH, :].set(patches)
    pp = pp.reshape(G, BT * N_ROW, PATCH_DIM)

    weight_args = [params["patch_w"], params["misc"], params["blk_vec"],
                   params["qkv_w"], params["proj_w"], params["fc1_w"],
                   params["fc2_w"], params["fc_w"]]
    args = [pp] + weight_args
    in_specs = [pl.BlockSpec((1, BT * N_ROW, PATCH_DIM), lambda g: (g, 0, 0))]
    in_specs += [_rep_spec(a) for a in weight_args]

    # advisory cost estimate so XLA schedules this tiny custom call sensibly
    flops_img = 2 * N_ROW * PATCH_DIM * D
    flops_img += DEPTH * (2 * N_ROW * D * 3 * D
                          + HEADS * 2 * (2 * N_ROW * N_ROW * HEAD_DIM)
                          + 2 * N_ROW * D * D
                          + 2 * 2 * N_ROW * D * MLP_HIDDEN)
    flops_img += 2 * N_ROW * D * OUT_PAD
    trans_img = DEPTH * (HEADS * N_ROW * N_ROW + N_ROW * MLP_HIDDEN) + 6 * N_ROW
    weight_bytes = sum(int(a.size) * a.dtype.itemsize for a in weight_args)
    bytes_accessed = int(pp.size) * 4 + weight_bytes + Bpad * N_ROW * OUT_PAD * 4

    out = pl.pallas_call(
        _deit_kernel,
        grid=(G,),
        in_specs=in_specs,
        out_specs=pl.BlockSpec((1, BT * N_ROW, OUT_PAD), lambda g: (g, 0, 0)),
        out_shape=jax.ShapeDtypeStruct((G, BT * N_ROW, OUT_PAD), jnp.float32),
        compiler_params=pltpu.CompilerParams(dimension_semantics=("parallel",)),
        cost_estimate=pl.CostEstimate(flops=int(Bpad * flops_img),
                                      transcendentals=int(Bpad * trans_img),
                                      bytes_accessed=int(bytes_accessed)),
    )(*args)

    # row 0 of each image's 8-row slab = cls-token logits; slice 40 real classes
    logits = out.reshape(Bpad, N_ROW, OUT_PAD)[:B, 0, :NUM_CLASSES * SEQ_LEN]
    return logits.reshape(B, SEQ_LEN, NUM_CLASSES)   # == view(-1, seq_len, num_classes)


# ----------------------------- main -----------------------------
if __name__ == "__main__":
    key = jax.random.PRNGKey(0)
    pkey, xkey = jax.random.split(key)
    params = init_params(pkey)
    x = jax.random.normal(xkey, (2, IN_CH, IMG, IMG), dtype=jnp.float32)   # NCHW like PyTorch

    fwd = jax.jit(captcha_deit_forward)
    out = jax.block_until_ready(fwd(params, x))
    assert out.shape == (2, SEQ_LEN, NUM_CLASSES), out.shape
    assert bool(jnp.all(jnp.isfinite(out)))
    print("KERNEL_OK")
</pallas_src>

<mosaic_0001>
module attributes {stable_mosaic.version = 11 : i64} {
  func.func @_deit_kernel(%arg0: i32, %arg1: memref<1x8x768xf32, #tpu.memory_space<vmem>>, %arg2: memref<768x64xbf16, #tpu.memory_space<vmem>>, %arg3: memref<16x128xf32, #tpu.memory_space<vmem>>, %arg4: memref<2x8x256xf32, #tpu.memory_space<vmem>>, %arg5: memref<2x64x192xbf16, #tpu.memory_space<vmem>>, %arg6: memref<2x64x64xbf16, #tpu.memory_space<vmem>>, %arg7: memref<2x64x256xbf16, #tpu.memory_space<vmem>>, %arg8: memref<2x256x64xbf16, #tpu.memory_space<vmem>>, %arg9: memref<64x128xbf16, #tpu.memory_space<vmem>>, %arg10: memref<1x8x128xf32, #tpu.memory_space<vmem>>) attributes {dimension_semantics = [#tpu.dimension_semantics<parallel>], iteration_bounds = array<i64: 2>, scalar_prefetch = 0 : i64, scratch_operands = 0 : i64, tpu.core_type = #tpu.core_type<tc>, window_params = [{transform_indices = @transform_0, window_bounds = array<i64: 1, 8, 768>}, {pipeline_mode = #tpu.pipeline_mode<synchronous>, transform_indices = @transform_1, window_bounds = array<i64: 768, 64>}, {pipeline_mode = #tpu.pipeline_mode<synchronous>, transform_indices = @transform_2, window_bounds = array<i64: 16, 128>}, {pipeline_mode = #tpu.pipeline_mode<synchronous>, transform_indices = @transform_3, window_bounds = array<i64: 2, 8, 256>}, {pipeline_mode = #tpu.pipeline_mode<synchronous>, transform_indices = @transform_4, window_bounds = array<i64: 2, 64, 192>}, {pipeline_mode = #tpu.pipeline_mode<synchronous>, transform_indices = @transform_5, window_bounds = array<i64: 2, 64, 64>}, {pipeline_mode = #tpu.pipeline_mode<synchronous>, transform_indices = @transform_6, window_bounds = array<i64: 2, 64, 256>}, {pipeline_mode = #tpu.pipeline_mode<synchronous>, transform_indices = @transform_7, window_bounds = array<i64: 2, 256, 64>}, {pipeline_mode = #tpu.pipeline_mode<synchronous>, transform_indices = @transform_8, window_bounds = array<i64: 64, 128>}, {transform_indices = @transform_9, window_bounds = array<i64: 1, 8, 128>}]} {
    %c0 = arith.constant 0 : index
    %c0_0 = arith.constant 0 : index
    %0 = vector.load %arg3[%c0, %c0_0] : memref<16x128xf32, #tpu.memory_space<vmem>>, vector<8x64xf32>
    %c8 = arith.constant 8 : index
    %c0_1 = arith.constant 0 : index
    %1 = vector.load %arg3[%c8, %c0_1] : memref<16x128xf32, #tpu.memory_space<vmem>>, vector<1x64xf32>
    %c9 = arith.constant 9 : index
    %c0_2 = arith.constant 0 : index
    %2 = vector.load %arg3[%c9, %c0_2] : memref<16x128xf32, #tpu.memory_space<vmem>>, vector<1x64xf32>
    %c10 = arith.constant 10 : index
    %c0_3 = arith.constant 0 : index
    %3 = vector.load %arg3[%c10, %c0_3] : memref<16x128xf32, #tpu.memory_space<vmem>>, vector<1x128xf32>
    %4 = tpu.iota {dimensions = array<i32: 2>} : vector<1x1x8xi32>
    %c5_i32 = arith.constant 5 : i32
    %5 = vector.broadcast %c5_i32 : i32 to vector<1x1x8xi32>
    %6 = arith.cmpi sge, %4, %5 : vector<1x1x8xi32>
    %cst = arith.constant -1.000000e+30 : f32
    %cst_4 = arith.constant 0.000000e+00 : f32
    %7 = vector.broadcast %cst : f32 to vector<1x1x8xf32>
    %8 = vector.broadcast %cst_4 : f32 to vector<1x1x8xf32>
    %9 = arith.select %6, %7, %8 : vector<1x1x8xi1>, vector<1x1x8xf32>
    %c0_5 = arith.constant 0 : index
    %c0_6 = arith.constant 0 : index
    %c0_7 = arith.constant 0 : index
    %10 = vector.load %arg1[%c0_5, %c0_6, %c0_7] : memref<1x8x768xf32, #tpu.memory_space<vmem>>, vector<1x8x768xf32>
    %11 = vector.shape_cast %10 : vector<1x8x768xf32> to vector<8x768xf32>
    %c0_8 = arith.constant 0 : index
    %c0_9 = arith.constant 0 : index
    %12 = vector.load %arg2[%c0_8, %c0_9] : memref<768x64xbf16, #tpu.memory_space<vmem>>, vector<768x64xbf16>
    %13 = arith.truncf %11 : vector<8x768xf32> to vector<8x768xbf16>
    %cst_10 = arith.constant dense<0.000000e+00> : vector<8x64xf32>
    %14 = tpu.matmul %13, %12, %cst_10 {dimension_numbers = #tpu.dot_dimension_numbers<[1], [0], [0], [1], [0, 0, 1, 1], [], []>} : vector<8x768xbf16>, vector<768x64xbf16>, vector<8x64xf32> -> vector<8x64xf32>
    %15 = vector.shape_cast %14 : vector<8x64xf32> to vector<1x8x64xf32>
    %16 = vector.shape_cast %0 : vector<8x64xf32> to vector<1x8x64xf32>
    %17 = arith.addf %15, %16 : vector<1x8x64xf32>
    %18 = vector.shape_cast %17 : vector<1x8x64xf32> to vector<8x64xf32>
    %c0_11 = arith.constant 0 : index
    %c0_12 = arith.constant 0 : index
    %c0_13 = arith.constant 0 : index
    %19 = vector.load %arg4[%c0_11, %c0_12, %c0_13] : memref<2x8x256xf32, #tpu.memory_space<vmem>>, vector<1x1x64xf32>
    %20 = vector.shape_cast %19 : vector<1x1x64xf32> to vector<1x64xf32>
    %c0_14 = arith.constant 0 : index
    %c1 = arith.constant 1 : index
    %c0_15 = arith.constant 0 : index
    %21 = vector.load %arg4[%c0_14, %c1, %c0_15] : memref<2x8x256xf32, #tpu.memory_space<vmem>>, vector<1x1x64xf32>
    %22 = vector.shape_cast %21 : vector<1x1x64xf32> to vector<1x64xf32>
    %c0_16 = arith.constant 0 : index
    %c2 = arith.constant 2 : index
    %c0_17 = arith.constant 0 : index
    %23 = vector.load %arg4[%c0_16, %c2, %c0_17] : memref<2x8x256xf32, #tpu.memory_space<vmem>>, vector<1x1x192xf32>
    %24 = vector.shape_cast %23 : vector<1x1x192xf32> to vector<1x192xf32>
    %c0_18 = arith.constant 0 : index
    %c3 = arith.constant 3 : index
    %c0_19 = arith.constant 0 : index
    %25 = vector.load %arg4[%c0_18, %c3, %c0_19] : memref<2x8x256xf32, #tpu.memory_space<vmem>>, vector<1x1x64xf32>
    %26 = vector.shape_cast %25 : vector<1x1x64xf32> to vector<1x64xf32>
    %c0_20 = arith.constant 0 : index
    %c4 = arith.constant 4 : index
    %c0_21 = arith.constant 0 : index
    %27 = vector.load %arg4[%c0_20, %c4, %c0_21] : memref<2x8x256xf32, #tpu.memory_space<vmem>>, vector<1x1x64xf32>
    %28 = vector.shape_cast %27 : vector<1x1x64xf32> to vector<1x64xf32>
    %c0_22 = arith.constant 0 : index
    %c5 = arith.constant 5 : index
    %c0_23 = arith.constant 0 : index
    %29 = vector.load %arg4[%c0_22, %c5, %c0_23] : memref<2x8x256xf32, #tpu.memory_space<vmem>>, vector<1x1x64xf32>
    %30 = vector.shape_cast %29 : vector<1x1x64xf32> to vector<1x64xf32>
    %c0_24 = arith.constant 0 : index
    %c6 = arith.constant 6 : index
    %c0_25 = arith.constant 0 : index
    %31 = vector.load %arg4[%c0_24, %c6, %c0_25] : memref<2x8x256xf32, #tpu.memory_space<vmem>>, vector<1x1x256xf32>
    %32 = vector.shape_cast %31 : vector<1x1x256xf32> to vector<1x256xf32>
    %c0_26 = arith.constant 0 : index
    %c7 = arith.constant 7 : index
    %c0_27 = arith.constant 0 : index
    %33 = vector.load %arg4[%c0_26, %c7, %c0_27] : memref<2x8x256xf32, #tpu.memory_space<vmem>>, vector<1x1x64xf32>
    %34 = vector.shape_cast %33 : vector<1x1x64xf32> to vector<1x64xf32>
    %cst_28 = arith.constant dense<0.000000e+00> : vector<8xf32>
    %35 = vector.multi_reduction <add>, %18, %cst_28 [1] : vector<8x64xf32> to vector<8xf32>
    %36 = vector.shape_cast %35 : vector<8xf32> to vector<8x1xf32>
    %cst_29 = arith.constant 6.400000e+01 : f32
    %37 = vector.broadcast %cst_29 : f32 to vector<8x1xf32>
    %38 = arith.divf %36, %37 : vector<8x1xf32>
    %39 = vector.broadcast %38 : vector<8x1xf32> to vector<8x64xf32>
    %40 = arith.subf %18, %39 : vector<8x64xf32>
    %41 = arith.mulf %40, %40 : vector<8x64xf32>
    %cst_30 = arith.constant dense<0.000000e+00> : vector<8xf32>
    %42 = vector.multi_reduction <add>, %41, %cst_30 [1] : vector<8x64xf32> to vector<8xf32>
    %43 = vector.shape_cast %42 : vector<8xf32> to vector<8x1xf32>
    %cst_31 = arith.constant 6.400000e+01 : f32
    %44 = vector.broadcast %cst_31 : f32 to vector<8x1xf32>
    %45 = arith.divf %43, %44 : vector<8x1xf32>
    %46 = vector.broadcast %38 : vector<8x1xf32> to vector<8x64xf32>
    %47 = arith.subf %18, %46 : vector<8x64xf32>
    %cst_32 = arith.constant 9.99999997E-7 : f32
    %48 = vector.broadcast %cst_32 : f32 to vector<8x1xf32>
    %49 = arith.addf %45, %48 : vector<8x1xf32>
    %50 = math.rsqrt %49 : vector<8x1xf32>
    %51 = vector.broadcast %50 : vector<8x1xf32> to vector<8x64xf32>
    %52 = arith.mulf %47, %51 : vector<8x64xf32>
    %53 = vector.broadcast %20 : vector<1x64xf32> to vector<8x64xf32>
    %54 = arith.mulf %52, %53 : vector<8x64xf32>
    %55 = vector.broadcast %22 : vector<1x64xf32> to vector<8x64xf32>
    %56 = arith.addf %54, %55 : vector<8x64xf32>
    %c0_33 = arith.constant 0 : index
    %c0_34 = arith.constant 0 : index
    %c0_35 = arith.constant 0 : index
    %57 = vector.load %arg5[%c0_33, %c0_34, %c0_35] : memref<2x64x192xbf16, #tpu.memory_space<vmem>>, vector<1x64x192xbf16>
    %58 = vector.shape_cast %57 : vector<1x64x192xbf16> to vector<64x192xbf16>
    %59 = arith.truncf %56 : vector<8x64xf32> to vector<8x64xbf16>
    %cst_36 = arith.constant dense<0.000000e+00> : vector<8x192xf32>
    %60 = tpu.matmul %59, %58, %cst_36 {dimension_numbers = #tpu.dot_dimension_numbers<[1], [0], [0], [1], [0, 0, 1, 1], [], []>} : vector<8x64xbf16>, vector<64x192xbf16>, vector<8x192xf32> -> vector<8x192xf32>
    %61 = vector.broadcast %24 : vector<1x192xf32> to vector<8x192xf32>
    %62 = arith.addf %60, %61 : vector<8x192xf32>
    %63 = vector.shape_cast %62 : vector<8x192xf32> to vector<1x8x192xf32>
    %cst_37 = arith.constant 0.000000e+00 : f32
    %64 = vector.broadcast %cst_37 : f32 to vector<8x64xf32>
    %65 = vector.extract_strided_slice %63 {offsets = [0, 0, 0], sizes = [1, 8, 16], strides = [1, 1, 1]} : vector<1x8x192xf32> to vector<1x8x16xf32>
    %66 = arith.truncf %65 : vector<1x8x16xf32> to vector<1x8x16xbf16>
    %67 = vector.extract_strided_slice %63 {offsets = [0, 0, 64], sizes = [1, 8, 16], strides = [1, 1, 1]} : vector<1x8x192xf32> to vector<1x8x16xf32>
    %68 = arith.truncf %67 : vector<1x8x16xf32> to vector<1x8x16xbf16>
    %69 = vector.extract_strided_slice %63 {offsets = [0, 0, 128], sizes = [1, 8, 16], strides = [1, 1, 1]} : vector<1x8x192xf32> to vector<1x8x16xf32>
    %70 = arith.truncf %69 : vector<1x8x16xf32> to vector<1x8x16xbf16>
    "tpu.trace_start"() <{level = 10 : i32, message = "bqd,bkd->bqk"}> : () -> ()
    %cst_38 = arith.constant dense<0.000000e+00> : vector<1x8x8xf32>
    %71 = tpu.matmul %66, %68, %cst_38 {dimension_numbers = #tpu.dot_dimension_numbers<[2], [2], [1], [1], [0, 0, 0, 1, 1, 1], [0], [0]>} : vector<1x8x16xbf16>, vector<1x8x16xbf16>, vector<1x8x8xf32> -> vector<1x8x8xf32>
    "tpu.trace_stop"() : () -> ()
    %cst_39 = arith.constant 2.500000e-01 : f32
    %72 = vector.broadcast %cst_39 : f32 to vector<1x8x8xf32>
    %73 = arith.mulf %71, %72 : vector<1x8x8xf32>
    %74 = vector.broadcast %9 : vector<1x1x8xf32> to vector<1x8x8xf32>
    %75 = arith.addf %73, %74 : vector<1x8x8xf32>
    %cst_40 = arith.constant dense<0xFF800000> : vector<1x8xf32>
    %76 = vector.multi_reduction <maximumf>, %75, %cst_40 [2] : vector<1x8x8xf32> to vector<1x8xf32>
    %77 = vector.shape_cast %76 : vector<1x8xf32> to vector<1x8x1xf32>
    %78 = vector.broadcast %77 : vector<1x8x1xf32> to vector<1x8x8xf32>
    %79 = arith.subf %75, %78 : vector<1x8x8xf32>
    %80 = math.exp %79 : vector<1x8x8xf32>
    %cst_41 = arith.constant dense<0.000000e+00> : vector<1x8xf32>
    %81 = vector.multi_reduction <add>, %80, %cst_41 [2] : vector<1x8x8xf32> to vector<1x8xf32>
    %82 = vector.shape_cast %81 : vector<1x8xf32> to vector<1x8x1xf32>
    %83 = tpu.reciprocal %82 {approx = true} : vector<1x8x1xf32> -> vector<1x8x1xf32>
    %84 = vector.broadcast %83 : vector<1x8x1xf32> to vector<1x8x8xf32>
    %85 = arith.mulf %80, %84 : vector<1x8x8xf32>
    %86 = arith.truncf %85 : vector<1x8x8xf32> to vector<1x8x8xbf16>
    "tpu.trace_start"() <{level = 10 : i32, message = "bqk,bkd->bqd"}> : () -> ()
    %cst_42 = arith.constant dense<0.000000e+00> : vector<1x8x16xf32>
    %87 = tpu.matmul %86, %70, %cst_42 {dimension_numbers = #tpu.dot_dimension_numbers<[2], [1], [1], [2], [0, 0, 0, 1, 1, 2], [0], [0]>} : vector<1x8x8xbf16>, vector<1x8x16xbf16>, vector<1x8x16xf32> -> vector<1x8x16xf32>
    "tpu.trace_stop"() : () -> ()
    %88 = vector.shape_cast %87 : vector<1x8x16xf32> to vector<8x16xf32>
    %c0_43 = arith.constant 0 : index
    %c0_44 = arith.constant 0 : index
    %c0_45 = arith.constant 0 : index
    %89 = vector.load %arg6[%c0_43, %c0_44, %c0_45] : memref<2x64x64xbf16, #tpu.memory_space<vmem>>, vector<1x16x64xbf16>
    %90 = vector.shape_cast %89 : vector<1x16x64xbf16> to vector<16x64xbf16>
    %91 = arith.truncf %88 : vector<8x16xf32> to vector<8x16xbf16>
    %cst_46 = arith.constant dense<0.000000e+00> : vector<8x64xf32>
    %92 = tpu.matmul %91, %90, %cst_46 {dimension_numbers = #tpu.dot_dimension_numbers<[1], [0], [0], [1], [0, 0, 1, 1], [], []>} : vector<8x16xbf16>, vector<16x64xbf16>, vector<8x64xf32> -> vector<8x64xf32>
    %93 = arith.addf %64, %92 : vector<8x64xf32>
    %94 = vector.extract_strided_slice %63 {offsets = [0, 0, 16], sizes = [1, 8, 16], strides = [1, 1, 1]} : vector<1x8x192xf32> to vector<1x8x16xf32>
    %95 = arith.truncf %94 : vector<1x8x16xf32> to vector<1x8x16xbf16>
    %96 = vector.extract_strided_slice %63 {offsets = [0, 0, 80], sizes = [1, 8, 16], strides = [1, 1, 1]} : vector<1x8x192xf32> to vector<1x8x16xf32>
    %97 = arith.truncf %96 : vector<1x8x16xf32> to vector<1x8x16xbf16>
    %98 = vector.extract_strided_slice %63 {offsets = [0, 0, 144], sizes = [1, 8, 16], strides = [1, 1, 1]} : vector<1x8x192xf32> to vector<1x8x16xf32>
    %99 = arith.truncf %98 : vector<1x8x16xf32> to vector<1x8x16xbf16>
    "tpu.trace_start"() <{level = 10 : i32, message = "bqd,bkd->bqk"}> : () -> ()
    %cst_47 = arith.constant dense<0.000000e+00> : vector<1x8x8xf32>
    %100 = tpu.matmul %95, %97, %cst_47 {dimension_numbers = #tpu.dot_dimension_numbers<[2], [2], [1], [1], [0, 0, 0, 1, 1, 1], [0], [0]>} : vector<1x8x16xbf16>, vector<1x8x16xbf16>, vector<1x8x8xf32> -> vector<1x8x8xf32>
    "tpu.trace_stop"() : () -> ()
    %cst_48 = arith.constant 2.500000e-01 : f32
    %101 = vector.broadcast %cst_48 : f32 to vector<1x8x8xf32>
    %102 = arith.mulf %100, %101 : vector<1x8x8xf32>
    %103 = vector.broadcast %9 : vector<1x1x8xf32> to vector<1x8x8xf32>
    %104 = arith.addf %102, %103 : vector<1x8x8xf32>
    %cst_49 = arith.constant dense<0xFF800000> : vector<1x8xf32>
    %105 = vector.multi_reduction <maximumf>, %104, %cst_49 [2] : vector<1x8x8xf32> to vector<1x8xf32>
    %106 = vector.shape_cast %105 : vector<1x8xf32> to vector<1x8x1xf32>
    %107 = vector.broadcast %106 : vector<1x8x1xf32> to vector<1x8x8xf32>
    %108 = arith.subf %104, %107 : vector<1x8x8xf32>
    %109 = math.exp %108 : vector<1x8x8xf32>
    %cst_50 = arith.constant dense<0.000000e+00> : vector<1x8xf32>
    %110 = vector.multi_reduction <add>, %109, %cst_50 [2] : vector<1x8x8xf32> to vector<1x8xf32>
    %111 = vector.shape_cast %110 : vector<1x8xf32> to vector<1x8x1xf32>
    %112 = tpu.reciprocal %111 {approx = true} : vector<1x8x1xf32> -> vector<1x8x1xf32>
    %113 = vector.broadcast %112 : vector<1x8x1xf32> to vector<1x8x8xf32>
    %114 = arith.mulf %109, %113 : vector<1x8x8xf32>
    %115 = arith.truncf %114 : vector<1x8x8xf32> to vector<1x8x8xbf16>
    "tpu.trace_start"() <{level = 10 : i32, message = "bqk,bkd->bqd"}> : () -> ()
    %cst_51 = arith.constant dense<0.000000e+00> : vector<1x8x16xf32>
    %116 = tpu.matmul %115, %99, %cst_51 {dimension_numbers = #tpu.dot_dimension_numbers<[2], [1], [1], [2], [0, 0, 0, 1, 1, 2], [0], [0]>} : vector<1x8x8xbf16>, vector<1x8x16xbf16>, vector<1x8x16xf32> -> vector<1x8x16xf32>
    "tpu.trace_stop"() : () -> ()
    %117 = vector.shape_cast %116 : vector<1x8x16xf32> to vector<8x16xf32>
    %c0_52 = arith.constant 0 : index
    %c16 = arith.constant 16 : index
    %c0_53 = arith.constant 0 : index
    %118 = vector.load %arg6[%c0_52, %c16, %c0_53] : memref<2x64x64xbf16, #tpu.memory_space<vmem>>, vector<1x16x64xbf16>
    %119 = vector.shape_cast %118 : vector<1x16x64xbf16> to vector<16x64xbf16>
    %120 = arith.truncf %117 : vector<8x16xf32> to vector<8x16xbf16>
    %cst_54 = arith.constant dense<0.000000e+00> : vector<8x64xf32>
    %121 = tpu.matmul %120, %119, %cst_54 {dimension_numbers = #tpu.dot_dimension_numbers<[1], [0], [0], [1], [0, 0, 1, 1], [], []>} : vector<8x16xbf16>, vector<16x64xbf16>, vector<8x64xf32> -> vector<8x64xf32>
    %122 = arith.addf %93, %121 : vector<8x64xf32>
    %123 = vector.extract_strided_slice %63 {offsets = [0, 0, 32], sizes = [1, 8, 16], strides = [1, 1, 1]} : vector<1x8x192xf32> to vector<1x8x16xf32>
    %124 = arith.truncf %123 : vector<1x8x16xf32> to vector<1x8x16xbf16>
    %125 = vector.extract_strided_slice %63 {offsets = [0, 0, 96], sizes = [1, 8, 16], strides = [1, 1, 1]} : vector<1x8x192xf32> to vector<1x8x16xf32>
    %126 = arith.truncf %125 : vector<1x8x16xf32> to vector<1x8x16xbf16>
    %127 = vector.extract_strided_slice %63 {offsets = [0, 0, 160], sizes = [1, 8, 16], strides = [1, 1, 1]} : vector<1x8x192xf32> to vector<1x8x16xf32>
    %128 = arith.truncf %127 : vector<1x8x16xf32> to vector<1x8x16xbf16>
    "tpu.trace_start"() <{level = 10 : i32, message = "bqd,bkd->bqk"}> : () -> ()
    %cst_55 = arith.constant dense<0.000000e+00> : vector<1x8x8xf32>
    %129 = tpu.matmul %124, %126, %cst_55 {dimension_numbers = #tpu.dot_dimension_numbers<[2], [2], [1], [1], [0, 0, 0, 1, 1, 1], [0], [0]>} : vector<1x8x16xbf16>, vector<1x8x16xbf16>, vector<1x8x8xf32> -> vector<1x8x8xf32>
    "tpu.trace_stop"() : () -> ()
    %cst_56 = arith.constant 2.500000e-01 : f32
    %130 = vector.broadcast %cst_56 : f32 to vector<1x8x8xf32>
    %131 = arith.mulf %129, %130 : vector<1x8x8xf32>
    %132 = vector.broadcast %9 : vector<1x1x8xf32> to vector<1x8x8xf32>
    %133 = arith.addf %131, %132 : vector<1x8x8xf32>
    %cst_57 = arith.constant dense<0xFF800000> : vector<1x8xf32>
    %134 = vector.multi_reduction <maximumf>, %133, %cst_57 [2] : vector<1x8x8xf32> to vector<1x8xf32>
    %135 = vector.shape_cast %134 : vector<1x8xf32> to vector<1x8x1xf32>
    %136 = vector.broadcast %135 : vector<1x8x1xf32> to vector<1x8x8xf32>
    %137 = arith.subf %133, %136 : vector<1x8x8xf32>
    %138 = math.exp %137 : vector<1x8x8xf32>
    %cst_58 = arith.constant dense<0.000000e+00> : vector<1x8xf32>
    %139 = vector.multi_reduction <add>, %138, %cst_58 [2] : vector<1x8x8xf32> to vector<1x8xf32>
    %140 = vector.shape_cast %139 : vector<1x8xf32> to vector<1x8x1xf32>
    %141 = tpu.reciprocal %140 {approx = true} : vector<1x8x1xf32> -> vector<1x8x1xf32>
    %142 = vector.broadcast %141 : vector<1x8x1xf32> to vector<1x8x8xf32>
    %143 = arith.mulf %138, %142 : vector<1x8x8xf32>
    %144 = arith.truncf %143 : vector<1x8x8xf32> to vector<1x8x8xbf16>
    "tpu.trace_start"() <{level = 10 : i32, message = "bqk,bkd->bqd"}> : () -> ()
    %cst_59 = arith.constant dense<0.000000e+00> : vector<1x8x16xf32>
    %145 = tpu.matmul %144, %128, %cst_59 {dimension_numbers = #tpu.dot_dimension_numbers<[2], [1], [1], [2], [0, 0, 0, 1, 1, 2], [0], [0]>} : vector<1x8x8xbf16>, vector<1x8x16xbf16>, vector<1x8x16xf32> -> vector<1x8x16xf32>
    "tpu.trace_stop"() : () -> ()
    %146 = vector.shape_cast %145 : vector<1x8x16xf32> to vector<8x16xf32>
    %c0_60 = arith.constant 0 : index
    %c32 = arith.constant 32 : index
    %c0_61 = arith.constant 0 : index
    %147 = vector.load %arg6[%c0_60, %c32, %c0_61] : memref<2x64x64xbf16, #tpu.memory_space<vmem>>, vector<1x16x64xbf16>
    %148 = vector.shape_cast %147 : vector<1x16x64xbf16> to vector<16x64xbf16>
    %149 = arith.truncf %146 : vector<8x16xf32> to vector<8x16xbf16>
    %cst_62 = arith.constant dense<0.000000e+00> : vector<8x64xf32>
    %150 = tpu.matmul %149, %148, %cst_62 {dimension_numbers = #tpu.dot_dimension_numbers<[1], [0], [0], [1], [0, 0, 1, 1], [], []>} : vector<8x16xbf16>, vector<16x64xbf16>, vector<8x64xf32> -> vector<8x64xf32>
    %151 = arith.addf %122, %150 : vector<8x64xf32>
    %152 = vector.extract_strided_slice %63 {offsets = [0, 0, 48], sizes = [1, 8, 16], strides = [1, 1, 1]} : vector<1x8x192xf32> to vector<1x8x16xf32>
    %153 = arith.truncf %152 : vector<1x8x16xf32> to vector<1x8x16xbf16>
    %154 = vector.extract_strided_slice %63 {offsets = [0, 0, 112], sizes = [1, 8, 16], strides = [1, 1, 1]} : vector<1x8x192xf32> to vector<1x8x16xf32>
    %155 = arith.truncf %154 : vector<1x8x16xf32> to vector<1x8x16xbf16>
    %156 = vector.extract_strided_slice %63 {offsets = [0, 0, 176], sizes = [1, 8, 16], strides = [1, 1, 1]} : vector<1x8x192xf32> to vector<1x8x16xf32>
    %157 = arith.truncf %156 : vector<1x8x16xf32> to vector<1x8x16xbf16>
    "tpu.trace_start"() <{level = 10 : i32, message = "bqd,bkd->bqk"}> : () -> ()
    %cst_63 = arith.constant dense<0.000000e+00> : vector<1x8x8xf32>
    %158 = tpu.matmul %153, %155, %cst_63 {dimension_numbers = #tpu.dot_dimension_numbers<[2], [2], [1], [1], [0, 0, 0, 1, 1, 1], [0], [0]>} : vector<1x8x16xbf16>, vector<1x8x16xbf16>, vector<1x8x8xf32> -> vector<1x8x8xf32>
    "tpu.trace_stop"() : () -> ()
    %cst_64 = arith.constant 2.500000e-01 : f32
    %159 = vector.broadcast %cst_64 : f32 to vector<1x8x8xf32>
    %160 = arith.mulf %158, %159 : vector<1x8x8xf32>
    %161 = vector.broadcast %9 : vector<1x1x8xf32> to vector<1x8x8xf32>
    %162 = arith.addf %160, %161 : vector<1x8x8xf32>
    %cst_65 = arith.constant dense<0xFF800000> : vector<1x8xf32>
    %163 = vector.multi_reduction <maximumf>, %162, %cst_65 [2] : vector<1x8x8xf32> to vector<1x8xf32>
    %164 = vector.shape_cast %163 : vector<1x8xf32> to vector<1x8x1xf32>
    %165 = vector.broadcast %164 : vector<1x8x1xf32> to vector<1x8x8xf32>
    %166 = arith.subf %162, %165 : vector<1x8x8xf32>
    %167 = math.exp %166 : vector<1x8x8xf32>
    %cst_66 = arith.constant dense<0.000000e+00> : vector<1x8xf32>
    %168 = vector.multi_reduction <add>, %167, %cst_66 [2] : vector<1x8x8xf32> to vector<1x8xf32>
    %169 = vector.shape_cast %168 : vector<1x8xf32> to vector<1x8x1xf32>
    %170 = tpu.reciprocal %169 {approx = true} : vector<1x8x1xf32> -> vector<1x8x1xf32>
    %171 = vector.broadcast %170 : vector<1x8x1xf32> to vector<1x8x8xf32>
    %172 = arith.mulf %167, %171 : vector<1x8x8xf32>
    %173 = arith.truncf %172 : vector<1x8x8xf32> to vector<1x8x8xbf16>
    "tpu.trace_start"() <{level = 10 : i32, message = "bqk,bkd->bqd"}> : () -> ()
    %cst_67 = arith.constant dense<0.000000e+00> : vector<1x8x16xf32>
    %174 = tpu.matmul %173, %157, %cst_67 {dimension_numbers = #tpu.dot_dimension_numbers<[2], [1], [1], [2], [0, 0, 0, 1, 1, 2], [0], [0]>} : vector<1x8x8xbf16>, vector<1x8x16xbf16>, vector<1x8x16xf32> -> vector<1x8x16xf32>
    "tpu.trace_stop"() : () -> ()
    %175 = vector.shape_cast %174 : vector<1x8x16xf32> to vector<8x16xf32>
    %c0_68 = arith.constant 0 : index
    %c48 = arith.constant 48 : index
    %c0_69 = arith.constant 0 : index
    %176 = vector.load %arg6[%c0_68, %c48, %c0_69] : memref<2x64x64xbf16, #tpu.memory_space<vmem>>, vector<1x16x64xbf16>
    %177 = vector.shape_cast %176 : vector<1x16x64xbf16> to vector<16x64xbf16>
    %178 = arith.truncf %175 : vector<8x16xf32> to vector<8x16xbf16>
    %cst_70 = arith.constant dense<0.000000e+00> : vector<8x64xf32>
    %179 = tpu.matmul %178, %177, %cst_70 {dimension_numbers = #tpu.dot_dimension_numbers<[1], [0], [0], [1], [0, 0, 1, 1], [], []>} : vector<8x16xbf16>, vector<16x64xbf16>, vector<8x64xf32> -> vector<8x64xf32>
    %180 = arith.addf %151, %179 : vector<8x64xf32>
    %181 = vector.broadcast %26 : vector<1x64xf32> to vector<8x64xf32>
    %182 = arith.addf %180, %181 : vector<8x64xf32>
    %183 = arith.addf %182, %18 : vector<8x64xf32>
    %cst_71 = arith.constant dense<0.000000e+00> : vector<8xf32>
    %184 = vector.multi_reduction <add>, %183, %cst_71 [1] : vector<8x64xf32> to vector<8xf32>
    %185 = vector.shape_cast %184 : vector<8xf32> to vector<8x1xf32>
    %cst_72 = arith.constant 6.400000e+01 : f32
    %186 = vector.broadcast %cst_72 : f32 to vector<8x1xf32>
    %187 = arith.divf %185, %186 : vector<8x1xf32>
    %188 = vector.broadcast %187 : vector<8x1xf32> to vector<8x64xf32>
    %189 = arith.subf %183, %188 : vector<8x64xf32>
    %190 = arith.mulf %189, %189 : vector<8x64xf32>
    %cst_73 = arith.constant dense<0.000000e+00> : vector<8xf32>
    %191 = vector.multi_reduction <add>, %190, %cst_73 [1] : vector<8x64xf32> to vector<8xf32>
    %192 = vector.shape_cast %191 : vector<8xf32> to vector<8x1xf32>
    %cst_74 = arith.constant 6.400000e+01 : f32
    %193 = vector.broadcast %cst_74 : f32 to vector<8x1xf32>
    %194 = arith.divf %192, %193 : vector<8x1xf32>
    %195 = vector.broadcast %187 : vector<8x1xf32> to vector<8x64xf32>
    %196 = arith.subf %183, %195 : vector<8x64xf32>
    %cst_75 = arith.constant 9.99999997E-7 : f32
    %197 = vector.broadcast %cst_75 : f32 to vector<8x1xf32>
    %198 = arith.addf %194, %197 : vector<8x1xf32>
    %199 = math.rsqrt %198 : vector<8x1xf32>
    %200 = vector.broadcast %199 : vector<8x1xf32> to vector<8x64xf32>
    %201 = arith.mulf %196, %200 : vector<8x64xf32>
    %202 = vector.broadcast %28 : vector<1x64xf32> to vector<8x64xf32>
    %203 = arith.mulf %201, %202 : vector<8x64xf32>
    %204 = vector.broadcast %30 : vector<1x64xf32> to vector<8x64xf32>
    %205 = arith.addf %203, %204 : vector<8x64xf32>
    %c0_76 = arith.constant 0 : index
    %c0_77 = arith.constant 0 : index
    %c0_78 = arith.constant 0 : index
    %206 = vector.load %arg7[%c0_76, %c0_77, %c0_78] : memref<2x64x256xbf16, #tpu.memory_space<vmem>>, vector<1x64x256xbf16>
    %207 = vector.shape_cast %206 : vector<1x64x256xbf16> to vector<64x256xbf16>
    %208 = arith.truncf %205 : vector<8x64xf32> to vector<8x64xbf16>
    %cst_79 = arith.constant dense<0.000000e+00> : vector<8x256xf32>
    %209 = tpu.matmul %208, %207, %cst_79 {dimension_numbers = #tpu.dot_dimension_numbers<[1], [0], [0], [1], [0, 0, 1, 1], [], []>} : vector<8x64xbf16>, vector<64x256xbf16>, vector<8x256xf32> -> vector<8x256xf32>
    %210 = vector.broadcast %32 : vector<1x256xf32> to vector<8x256xf32>
    %211 = arith.addf %209, %210 : vector<8x256xf32>
    %212 = arith.mulf %211, %211 : vector<8x256xf32>
    %213 = arith.mulf %211, %212 : vector<8x256xf32>
    %cst_80 = arith.constant 4.471500e-02 : f32
    %214 = vector.broadcast %cst_80 : f32 to vector<8x256xf32>
    %215 = arith.mulf %214, %213 : vector<8x256xf32>
    %216 = arith.addf %211, %215 : vector<8x256xf32>
    %cst_81 = arith.constant 0.797884583 : f32
    %217 = vector.broadcast %cst_81 : f32 to vector<8x256xf32>
    %218 = arith.mulf %217, %216 : vector<8x256xf32>
    %219 = math.tanh %218 : vector<8x256xf32>
    %cst_82 = arith.constant 1.000000e+00 : f32
    %220 = vector.broadcast %cst_82 : f32 to vector<8x256xf32>
    %221 = arith.addf %220, %219 : vector<8x256xf32>
    %cst_83 = arith.constant 5.000000e-01 : f32
    %222 = vector.broadcast %cst_83 : f32 to vector<8x256xf32>
    %223 = arith.mulf %222, %221 : vector<8x256xf32>
    %224 = arith.mulf %211, %223 : vector<8x256xf32>
    %c0_84 = arith.constant 0 : index
    %c0_85 = arith.constant 0 : index
    %c0_86 = arith.constant 0 : index
    %225 = vector.load %arg8[%c0_84, %c0_85, %c0_86] : memref<2x256x64xbf16, #tpu.memory_space<vmem>>, vector<1x256x64xbf16>
    %226 = vector.shape_cast %225 : vector<1x256x64xbf16> to vector<256x64xbf16>
    %227 = arith.truncf %224 : vector<8x256xf32> to vector<8x256xbf16>
    %cst_87 = arith.constant dense<0.000000e+00> : vector<8x64xf32>
    %228 = tpu.matmul %227, %226, %cst_87 {dimension_numbers = #tpu.dot_dimension_numbers<[1], [0], [0], [1], [0, 0, 1, 1], [], []>} : vector<8x256xbf16>, vector<256x64xbf16>, vector<8x64xf32> -> vector<8x64xf32>
    %229 = vector.broadcast %34 : vector<1x64xf32> to vector<8x64xf32>
    %230 = arith.addf %228, %229 : vector<8x64xf32>
    %231 = arith.addf %230, %183 : vector<8x64xf32>
    %c1_88 = arith.constant 1 : index
    %c0_89 = arith.constant 0 : index
    %c0_90 = arith.constant 0 : index
    %232 = vector.load %arg4[%c1_88, %c0_89, %c0_90] : memref<2x8x256xf32, #tpu.memory_space<vmem>>, vector<1x1x64xf32>
    %233 = vector.shape_cast %232 : vector<1x1x64xf32> to vector<1x64xf32>
    %c1_91 = arith.constant 1 : index
    %c1_92 = arith.constant 1 : index
    %c0_93 = arith.constant 0 : index
    %234 = vector.load %arg4[%c1_91, %c1_92, %c0_93] : memref<2x8x256xf32, #tpu.memory_space<vmem>>, vector<1x1x64xf32>
    %235 = vector.shape_cast %234 : vector<1x1x64xf32> to vector<1x64xf32>
    %c1_94 = arith.constant 1 : index
    %c2_95 = arith.constant 2 : index
    %c0_96 = arith.constant 0 : index
    %236 = vector.load %arg4[%c1_94, %c2_95, %c0_96] : memref<2x8x256xf32, #tpu.memory_space<vmem>>, vector<1x1x192xf32>
    %237 = vector.shape_cast %236 : vector<1x1x192xf32> to vector<1x192xf32>
    %c1_97 = arith.constant 1 : index
    %c3_98 = arith.constant 3 : index
    %c0_99 = arith.constant 0 : index
    %238 = vector.load %arg4[%c1_97, %c3_98, %c0_99] : memref<2x8x256xf32, #tpu.memory_space<vmem>>, vector<1x1x64xf32>
    %239 = vector.shape_cast %238 : vector<1x1x64xf32> to vector<1x64xf32>
    %c1_100 = arith.constant 1 : index
    %c4_101 = arith.constant 4 : index
    %c0_102 = arith.constant 0 : index
    %240 = vector.load %arg4[%c1_100, %c4_101, %c0_102] : memref<2x8x256xf32, #tpu.memory_space<vmem>>, vector<1x1x64xf32>
    %241 = vector.shape_cast %240 : vector<1x1x64xf32> to vector<1x64xf32>
    %c1_103 = arith.constant 1 : index
    %c5_104 = arith.constant 5 : index
    %c0_105 = arith.constant 0 : index
    %242 = vector.load %arg4[%c1_103, %c5_104, %c0_105] : memref<2x8x256xf32, #tpu.memory_space<vmem>>, vector<1x1x64xf32>
    %243 = vector.shape_cast %242 : vector<1x1x64xf32> to vector<1x64xf32>
    %c1_106 = arith.constant 1 : index
    %c6_107 = arith.constant 6 : index
    %c0_108 = arith.constant 0 : index
    %244 = vector.load %arg4[%c1_106, %c6_107, %c0_108] : memref<2x8x256xf32, #tpu.memory_space<vmem>>, vector<1x1x256xf32>
    %245 = vector.shape_cast %244 : vector<1x1x256xf32> to vector<1x256xf32>
    %c1_109 = arith.constant 1 : index
    %c7_110 = arith.constant 7 : index
    %c0_111 = arith.constant 0 : index
    %246 = vector.load %arg4[%c1_109, %c7_110, %c0_111] : memref<2x8x256xf32, #tpu.memory_space<vmem>>, vector<1x1x64xf32>
    %247 = vector.shape_cast %246 : vector<1x1x64xf32> to vector<1x64xf32>
    %cst_112 = arith.constant dense<0.000000e+00> : vector<8xf32>
    %248 = vector.multi_reduction <add>, %231, %cst_112 [1] : vector<8x64xf32> to vector<8xf32>
    %249 = vector.shape_cast %248 : vector<8xf32> to vector<8x1xf32>
    %cst_113 = arith.constant 6.400000e+01 : f32
    %250 = vector.broadcast %cst_113 : f32 to vector<8x1xf32>
    %251 = arith.divf %249, %250 : vector<8x1xf32>
    %252 = vector.broadcast %251 : vector<8x1xf32> to vector<8x64xf32>
    %253 = arith.subf %231, %252 : vector<8x64xf32>
    %254 = arith.mulf %253, %253 : vector<8x64xf32>
    %cst_114 = arith.constant dense<0.000000e+00> : vector<8xf32>
    %255 = vector.multi_reduction <add>, %254, %cst_114 [1] : vector<8x64xf32> to vector<8xf32>
    %256 = vector.shape_cast %255 : vector<8xf32> to vector<8x1xf32>
    %cst_115 = arith.constant 6.400000e+01 : f32
    %257 = vector.broadcast %cst_115 : f32 to vector<8x1xf32>
    %258 = arith.divf %256, %257 : vector<8x1xf32>
    %259 = vector.broadcast %251 : vector<8x1xf32> to vector<8x64xf32>
    %260 = arith.subf %231, %259 : vector<8x64xf32>
    %cst_116 = arith.constant 9.99999997E-7 : f32
    %261 = vector.broadcast %cst_116 : f32 to vector<8x1xf32>
    %262 = arith.addf %258, %261 : vector<8x1xf32>
    %263 = math.rsqrt %262 : vector<8x1xf32>
    %264 = vector.broadcast %263 : vector<8x1xf32> to vector<8x64xf32>
    %265 = arith.mulf %260, %264 : vector<8x64xf32>
    %266 = vector.broadcast %233 : vector<1x64xf32> to vector<8x64xf32>
    %267 = arith.mulf %265, %266 : vector<8x64xf32>
    %268 = vector.broadcast %235 : vector<1x64xf32> to vector<8x64xf32>
    %269 = arith.addf %267, %268 : vector<8x64xf32>
    %c1_117 = arith.constant 1 : index
    %c0_118 = arith.constant 0 : index
    %c0_119 = arith.constant 0 : index
    %270 = vector.load %arg5[%c1_117, %c0_118, %c0_119] : memref<2x64x192xbf16, #tpu.memory_space<vmem>>, vector<1x64x192xbf16>
    %271 = vector.shape_cast %270 : vector<1x64x192xbf16> to vector<64x192xbf16>
    %272 = arith.truncf %269 : vector<8x64xf32> to vector<8x64xbf16>
    %cst_120 = arith.constant dense<0.000000e+00> : vector<8x192xf32>
    %273 = tpu.matmul %272, %271, %cst_120 {dimension_numbers = #tpu.dot_dimension_numbers<[1], [0], [0], [1], [0, 0, 1, 1], [], []>} : vector<8x64xbf16>, vector<64x192xbf16>, vector<8x192xf32> -> vector<8x192xf32>
    %274 = vector.broadcast %237 : vector<1x192xf32> to vector<8x192xf32>
    %275 = arith.addf %273, %274 : vector<8x192xf32>
    %276 = vector.shape_cast %275 : vector<8x192xf32> to vector<1x8x192xf32>
    %cst_121 = arith.constant 0.000000e+00 : f32
    %277 = vector.broadcast %cst_121 : f32 to vector<8x64xf32>
    %278 = vector.extract_strided_slice %276 {offsets = [0, 0, 0], sizes = [1, 8, 16], strides = [1, 1, 1]} : vector<1x8x192xf32> to vector<1x8x16xf32>
    %279 = arith.truncf %278 : vector<1x8x16xf32> to vector<1x8x16xbf16>
    %280 = vector.extract_strided_slice %276 {offsets = [0, 0, 64], sizes = [1, 8, 16], strides = [1, 1, 1]} : vector<1x8x192xf32> to vector<1x8x16xf32>
    %281 = arith.truncf %280 : vector<1x8x16xf32> to vector<1x8x16xbf16>
    %282 = vector.extract_strided_slice %276 {offsets = [0, 0, 128], sizes = [1, 8, 16], strides = [1, 1, 1]} : vector<1x8x192xf32> to vector<1x8x16xf32>
    %283 = arith.truncf %282 : vector<1x8x16xf32> to vector<1x8x16xbf16>
    "tpu.trace_start"() <{level = 10 : i32, message = "bqd,bkd->bqk"}> : () -> ()
    %cst_122 = arith.constant dense<0.000000e+00> : vector<1x8x8xf32>
    %284 = tpu.matmul %279, %281, %cst_122 {dimension_numbers = #tpu.dot_dimension_numbers<[2], [2], [1], [1], [0, 0, 0, 1, 1, 1], [0], [0]>} : vector<1x8x16xbf16>, vector<1x8x16xbf16>, vector<1x8x8xf32> -> vector<1x8x8xf32>
    "tpu.trace_stop"() : () -> ()
    %cst_123 = arith.constant 2.500000e-01 : f32
    %285 = vector.broadcast %cst_123 : f32 to vector<1x8x8xf32>
    %286 = arith.mulf %284, %285 : vector<1x8x8xf32>
    %287 = vector.broadcast %9 : vector<1x1x8xf32> to vector<1x8x8xf32>
    %288 = arith.addf %286, %287 : vector<1x8x8xf32>
    %cst_124 = arith.constant dense<0xFF800000> : vector<1x8xf32>
    %289 = vector.multi_reduction <maximumf>, %288, %cst_124 [2] : vector<1x8x8xf32> to vector<1x8xf32>
    %290 = vector.shape_cast %289 : vector<1x8xf32> to vector<1x8x1xf32>
    %291 = vector.broadcast %290 : vector<1x8x1xf32> to vector<1x8x8xf32>
    %292 = arith.subf %288, %291 : vector<1x8x8xf32>
    %293 = math.exp %292 : vector<1x8x8xf32>
    %cst_125 = arith.constant dense<0.000000e+00> : vector<1x8xf32>
    %294 = vector.multi_reduction <add>, %293, %cst_125 [2] : vector<1x8x8xf32> to vector<1x8xf32>
    %295 = vector.shape_cast %294 : vector<1x8xf32> to vector<1x8x1xf32>
    %296 = tpu.reciprocal %295 {approx = true} : vector<1x8x1xf32> -> vector<1x8x1xf32>
    %297 = vector.broadcast %296 : vector<1x8x1xf32> to vector<1x8x8xf32>
    %298 = arith.mulf %293, %297 : vector<1x8x8xf32>
    %299 = arith.truncf %298 : vector<1x8x8xf32> to vector<1x8x8xbf16>
    "tpu.trace_start"() <{level = 10 : i32, message = "bqk,bkd->bqd"}> : () -> ()
    %cst_126 = arith.constant dense<0.000000e+00> : vector<1x8x16xf32>
    %300 = tpu.matmul %299, %283, %cst_126 {dimension_numbers = #tpu.dot_dimension_numbers<[2], [1], [1], [2], [0, 0, 0, 1, 1, 2], [0], [0]>} : vector<1x8x8xbf16>, vector<1x8x16xbf16>, vector<1x8x16xf32> -> vector<1x8x16xf32>
    "tpu.trace_stop"() : () -> ()
    %301 = vector.shape_cast %300 : vector<1x8x16xf32> to vector<8x16xf32>
    %c1_127 = arith.constant 1 : index
    %c0_128 = arith.constant 0 : index
    %c0_129 = arith.constant 0 : index
    %302 = vector.load %arg6[%c1_127, %c0_128, %c0_129] : memref<2x64x64xbf16, #tpu.memory_space<vmem>>, vector<1x16x64xbf16>
    %303 = vector.shape_cast %302 : vector<1x16x64xbf16> to vector<16x64xbf16>
    %304 = arith.truncf %301 : vector<8x16xf32> to vector<8x16xbf16>
    %cst_130 = arith.constant dense<0.000000e+00> : vector<8x64xf32>
    %305 = tpu.matmul %304, %303, %cst_130 {dimension_numbers = #tpu.dot_dimension_numbers<[1], [0], [0], [1], [0, 0, 1, 1], [], []>} : vector<8x16xbf16>, vector<16x64xbf16>, vector<8x64xf32> -> vector<8x64xf32>
    %306 = arith.addf %277, %305 : vector<8x64xf32>
    %307 = vector.extract_strided_slice %276 {offsets = [0, 0, 16], sizes = [1, 8, 16], strides = [1, 1, 1]} : vector<1x8x192xf32> to vector<1x8x16xf32>
    %308 = arith.truncf %307 : vector<1x8x16xf32> to vector<1x8x16xbf16>
    %309 = vector.extract_strided_slice %276 {offsets = [0, 0, 80], sizes = [1, 8, 16], strides = [1, 1, 1]} : vector<1x8x192xf32> to vector<1x8x16xf32>
    %310 = arith.truncf %309 : vector<1x8x16xf32> to vector<1x8x16xbf16>
    %311 = vector.extract_strided_slice %276 {offsets = [0, 0, 144], sizes = [1, 8, 16], strides = [1, 1, 1]} : vector<1x8x192xf32> to vector<1x8x16xf32>
    %312 = arith.truncf %311 : vector<1x8x16xf32> to vector<1x8x16xbf16>
    "tpu.trace_start"() <{level = 10 : i32, message = "bqd,bkd->bqk"}> : () -> ()
    %cst_131 = arith.constant dense<0.000000e+00> : vector<1x8x8xf32>
    %313 = tpu.matmul %308, %310, %cst_131 {dimension_numbers = #tpu.dot_dimension_numbers<[2], [2], [1], [1], [0, 0, 0, 1, 1, 1], [0], [0]>} : vector<1x8x16xbf16>, vector<1x8x16xbf16>, vector<1x8x8xf32> -> vector<1x8x8xf32>
    "tpu.trace_stop"() : () -> ()
    %cst_132 = arith.constant 2.500000e-01 : f32
    %314 = vector.broadcast %cst_132 : f32 to vector<1x8x8xf32>
    %315 = arith.mulf %313, %314 : vector<1x8x8xf32>
    %316 = vector.broadcast %9 : vector<1x1x8xf32> to vector<1x8x8xf32>
    %317 = arith.addf %315, %316 : vector<1x8x8xf32>
    %cst_133 = arith.constant dense<0xFF800000> : vector<1x8xf32>
    %318 = vector.multi_reduction <maximumf>, %317, %cst_133 [2] : vector<1x8x8xf32> to vector<1x8xf32>
    %319 = vector.shape_cast %318 : vector<1x8xf32> to vector<1x8x1xf32>
    %320 = vector.broadcast %319 : vector<1x8x1xf32> to vector<1x8x8xf32>
    %321 = arith.subf %317, %320 : vector<1x8x8xf32>
    %322 = math.exp %321 : vector<1x8x8xf32>
    %cst_134 = arith.constant dense<0.000000e+00> : vector<1x8xf32>
    %323 = vector.multi_reduction <add>, %322, %cst_134 [2] : vector<1x8x8xf32> to vector<1x8xf32>
    %324 = vector.shape_cast %323 : vector<1x8xf32> to vector<1x8x1xf32>
    %325 = tpu.reciprocal %324 {approx = true} : vector<1x8x1xf32> -> vector<1x8x1xf32>
    %326 = vector.broadcast %325 : vector<1x8x1xf32> to vector<1x8x8xf32>
    %327 = arith.mulf %322, %326 : vector<1x8x8xf32>
    %328 = arith.truncf %327 : vector<1x8x8xf32> to vector<1x8x8xbf16>
    "tpu.trace_start"() <{level = 10 : i32, message = "bqk,bkd->bqd"}> : () -> ()
    %cst_135 = arith.constant dense<0.000000e+00> : vector<1x8x16xf32>
    %329 = tpu.matmul %328, %312, %cst_135 {dimension_numbers = #tpu.dot_dimension_numbers<[2], [1], [1], [2], [0, 0, 0, 1, 1, 2], [0], [0]>} : vector<1x8x8xbf16>, vector<1x8x16xbf16>, vector<1x8x16xf32> -> vector<1x8x16xf32>
    "tpu.trace_stop"() : () -> ()
    %330 = vector.shape_cast %329 : vector<1x8x16xf32> to vector<8x16xf32>
    %c1_136 = arith.constant 1 : index
    %c16_137 = arith.constant 16 : index
    %c0_138 = arith.constant 0 : index
    %331 = vector.load %arg6[%c1_136, %c16_137, %c0_138] : memref<2x64x64xbf16, #tpu.memory_space<vmem>>, vector<1x16x64xbf16>
    %332 = vector.shape_cast %331 : vector<1x16x64xbf16> to vector<16x64xbf16>
    %333 = arith.truncf %330 : vector<8x16xf32> to vector<8x16xbf16>
    %cst_139 = arith.constant dense<0.000000e+00> : vector<8x64xf32>
    %334 = tpu.matmul %333, %332, %cst_139 {dimension_numbers = #tpu.dot_dimension_numbers<[1], [0], [0], [1], [0, 0, 1, 1], [], []>} : vector<8x16xbf16>, vector<16x64xbf16>, vector<8x64xf32> -> vector<8x64xf32>
    %335 = arith.addf %306, %334 : vector<8x64xf32>
    %336 = vector.extract_strided_slice %276 {offsets = [0, 0, 32], sizes = [1, 8, 16], strides = [1, 1, 1]} : vector<1x8x192xf32> to vector<1x8x16xf32>
    %337 = arith.truncf %336 : vector<1x8x16xf32> to vector<1x8x16xbf16>
    %338 = vector.extract_strided_slice %276 {offsets = [0, 0, 96], sizes = [1, 8, 16], strides = [1, 1, 1]} : vector<1x8x192xf32> to vector<1x8x16xf32>
    %339 = arith.truncf %338 : vector<1x8x16xf32> to vector<1x8x16xbf16>
    %340 = vector.extract_strided_slice %276 {offsets = [0, 0, 160], sizes = [1, 8, 16], strides = [1, 1, 1]} : vector<1x8x192xf32> to vector<1x8x16xf32>
    %341 = arith.truncf %340 : vector<1x8x16xf32> to vector<1x8x16xbf16>
    "tpu.trace_start"() <{level = 10 : i32, message = "bqd,bkd->bqk"}> : () -> ()
    %cst_140 = arith.constant dense<0.000000e+00> : vector<1x8x8xf32>
    %342 = tpu.matmul %337, %339, %cst_140 {dimension_numbers = #tpu.dot_dimension_numbers<[2], [2], [1], [1], [0, 0, 0, 1, 1, 1], [0], [0]>} : vector<1x8x16xbf16>, vector<1x8x16xbf16>, vector<1x8x8xf32> -> vector<1x8x8xf32>
    "tpu.trace_stop"() : () -> ()
    %cst_141 = arith.constant 2.500000e-01 : f32
    %343 = vector.broadcast %cst_141 : f32 to vector<1x8x8xf32>
    %344 = arith.mulf %342, %343 : vector<1x8x8xf32>
    %345 = vector.broadcast %9 : vector<1x1x8xf32> to vector<1x8x8xf32>
    %346 = arith.addf %344, %345 : vector<1x8x8xf32>
    %cst_142 = arith.constant dense<0xFF800000> : vector<1x8xf32>
    %347 = vector.multi_reduction <maximumf>, %346, %cst_142 [2] : vector<1x8x8xf32> to vector<1x8xf32>
    %348 = vector.shape_cast %347 : vector<1x8xf32> to vector<1x8x1xf32>
    %349 = vector.broadcast %348 : vector<1x8x1xf32> to vector<1x8x8xf32>
    %350 = arith.subf %346, %349 : vector<1x8x8xf32>
    %351 = math.exp %350 : vector<1x8x8xf32>
    %cst_143 = arith.constant dense<0.000000e+00> : vector<1x8xf32>
    %352 = vector.multi_reduction <add>, %351, %cst_143 [2] : vector<1x8x8xf32> to vector<1x8xf32>
    %353 = vector.shape_cast %352 : vector<1x8xf32> to vector<1x8x1xf32>
    %354 = tpu.reciprocal %353 {approx = true} : vector<1x8x1xf32> -> vector<1x8x1xf32>
    %355 = vector.broadcast %354 : vector<1x8x1xf32> to vector<1x8x8xf32>
    %356 = arith.mulf %351, %355 : vector<1x8x8xf32>
    %357 = arith.truncf %356 : vector<1x8x8xf32> to vector<1x8x8xbf16>
    "tpu.trace_start"() <{level = 10 : i32, message = "bqk,bkd->bqd"}> : () -> ()
    %cst_144 = arith.constant dense<0.000000e+00> : vector<1x8x16xf32>
    %358 = tpu.matmul %357, %341, %cst_144 {dimension_numbers = #tpu.dot_dimension_numbers<[2], [1], [1], [2], [0, 0, 0, 1, 1, 2], [0], [0]>} : vector<1x8x8xbf16>, vector<1x8x16xbf16>, vector<1x8x16xf32> -> vector<1x8x16xf32>
    "tpu.trace_stop"() : () -> ()
    %359 = vector.shape_cast %358 : vector<1x8x16xf32> to vector<8x16xf32>
    %c1_145 = arith.constant 1 : index
    %c32_146 = arith.constant 32 : index
    %c0_147 = arith.constant 0 : index
    %360 = vector.load %arg6[%c1_145, %c32_146, %c0_147] : memref<2x64x64xbf16, #tpu.memory_space<vmem>>, vector<1x16x64xbf16>
    %361 = vector.shape_cast %360 : vector<1x16x64xbf16> to vector<16x64xbf16>
    %362 = arith.truncf %359 : vector<8x16xf32> to vector<8x16xbf16>
    %cst_148 = arith.constant dense<0.000000e+00> : vector<8x64xf32>
    %363 = tpu.matmul %362, %361, %cst_148 {dimension_numbers = #tpu.dot_dimension_numbers<[1], [0], [0], [1], [0, 0, 1, 1], [], []>} : vector<8x16xbf16>, vector<16x64xbf16>, vector<8x64xf32> -> vector<8x64xf32>
    %364 = arith.addf %335, %363 : vector<8x64xf32>
    %365 = vector.extract_strided_slice %276 {offsets = [0, 0, 48], sizes = [1, 8, 16], strides = [1, 1, 1]} : vector<1x8x192xf32> to vector<1x8x16xf32>
    %366 = arith.truncf %365 : vector<1x8x16xf32> to vector<1x8x16xbf16>
    %367 = vector.extract_strided_slice %276 {offsets = [0, 0, 112], sizes = [1, 8, 16], strides = [1, 1, 1]} : vector<1x8x192xf32> to vector<1x8x16xf32>
    %368 = arith.truncf %367 : vector<1x8x16xf32> to vector<1x8x16xbf16>
    %369 = vector.extract_strided_slice %276 {offsets = [0, 0, 176], sizes = [1, 8, 16], strides = [1, 1, 1]} : vector<1x8x192xf32> to vector<1x8x16xf32>
    %370 = arith.truncf %369 : vector<1x8x16xf32> to vector<1x8x16xbf16>
    "tpu.trace_start"() <{level = 10 : i32, message = "bqd,bkd->bqk"}> : () -> ()
    %cst_149 = arith.constant dense<0.000000e+00> : vector<1x8x8xf32>
    %371 = tpu.matmul %366, %368, %cst_149 {dimension_numbers = #tpu.dot_dimension_numbers<[2], [2], [1], [1], [0, 0, 0, 1, 1, 1], [0], [0]>} : vector<1x8x16xbf16>, vector<1x8x16xbf16>, vector<1x8x8xf32> -> vector<1x8x8xf32>
    "tpu.trace_stop"() : () -> ()
    %cst_150 = arith.constant 2.500000e-01 : f32
    %372 = vector.broadcast %cst_150 : f32 to vector<1x8x8xf32>
    %373 = arith.mulf %371, %372 : vector<1x8x8xf32>
    %374 = vector.broadcast %9 : vector<1x1x8xf32> to vector<1x8x8xf32>
    %375 = arith.addf %373, %374 : vector<1x8x8xf32>
    %cst_151 = arith.constant dense<0xFF800000> : vector<1x8xf32>
    %376 = vector.multi_reduction <maximumf>, %375, %cst_151 [2] : vector<1x8x8xf32> to vector<1x8xf32>
    %377 = vector.shape_cast %376 : vector<1x8xf32> to vector<1x8x1xf32>
    %378 = vector.broadcast %377 : vector<1x8x1xf32> to vector<1x8x8xf32>
    %379 = arith.subf %375, %378 : vector<1x8x8xf32>
    %380 = math.exp %379 : vector<1x8x8xf32>
    %cst_152 = arith.constant dense<0.000000e+00> : vector<1x8xf32>
    %381 = vector.multi_reduction <add>, %380, %cst_152 [2] : vector<1x8x8xf32> to vector<1x8xf32>
    %382 = vector.shape_cast %381 : vector<1x8xf32> to vector<1x8x1xf32>
    %383 = tpu.reciprocal %382 {approx = true} : vector<1x8x1xf32> -> vector<1x8x1xf32>
    %384 = vector.broadcast %383 : vector<1x8x1xf32> to vector<1x8x8xf32>
    %385 = arith.mulf %380, %384 : vector<1x8x8xf32>
    %386 = arith.truncf %385 : vector<1x8x8xf32> to vector<1x8x8xbf16>
    "tpu.trace_start"() <{level = 10 : i32, message = "bqk,bkd->bqd"}> : () -> ()
    %cst_153 = arith.constant dense<0.000000e+00> : vector<1x8x16xf32>
    %387 = tpu.matmul %386, %370, %cst_153 {dimension_numbers = #tpu.dot_dimension_numbers<[2], [1], [1], [2], [0, 0, 0, 1, 1, 2], [0], [0]>} : vector<1x8x8xbf16>, vector<1x8x16xbf16>, vector<1x8x16xf32> -> vector<1x8x16xf32>
    "tpu.trace_stop"() : () -> ()
    %388 = vector.shape_cast %387 : vector<1x8x16xf32> to vector<8x16xf32>
    %c1_154 = arith.constant 1 : index
    %c48_155 = arith.constant 48 : index
    %c0_156 = arith.constant 0 : index
    %389 = vector.load %arg6[%c1_154, %c48_155, %c0_156] : memref<2x64x64xbf16, #tpu.memory_space<vmem>>, vector<1x16x64xbf16>
    %390 = vector.shape_cast %389 : vector<1x16x64xbf16> to vector<16x64xbf16>
    %391 = arith.truncf %388 : vector<8x16xf32> to vector<8x16xbf16>
    %cst_157 = arith.constant dense<0.000000e+00> : vector<8x64xf32>
    %392 = tpu.matmul %391, %390, %cst_157 {dimension_numbers = #tpu.dot_dimension_numbers<[1], [0], [0], [1], [0, 0, 1, 1], [], []>} : vector<8x16xbf16>, vector<16x64xbf16>, vector<8x64xf32> -> vector<8x64xf32>
    %393 = arith.addf %364, %392 : vector<8x64xf32>
    %394 = vector.broadcast %239 : vector<1x64xf32> to vector<8x64xf32>
    %395 = arith.addf %393, %394 : vector<8x64xf32>
    %396 = arith.addf %395, %231 : vector<8x64xf32>
    %cst_158 = arith.constant dense<0.000000e+00> : vector<8xf32>
    %397 = vector.multi_reduction <add>, %396, %cst_158 [1] : vector<8x64xf32> to vector<8xf32>
    %398 = vector.shape_cast %397 : vector<8xf32> to vector<8x1xf32>
    %cst_159 = arith.constant 6.400000e+01 : f32
    %399 = vector.broadcast %cst_159 : f32 to vector<8x1xf32>
    %400 = arith.divf %398, %399 : vector<8x1xf32>
    %401 = vector.broadcast %400 : vector<8x1xf32> to vector<8x64xf32>
    %402 = arith.subf %396, %401 : vector<8x64xf32>
    %403 = arith.mulf %402, %402 : vector<8x64xf32>
    %cst_160 = arith.constant dense<0.000000e+00> : vector<8xf32>
    %404 = vector.multi_reduction <add>, %403, %cst_160 [1] : vector<8x64xf32> to vector<8xf32>
    %405 = vector.shape_cast %404 : vector<8xf32> to vector<8x1xf32>
    %cst_161 = arith.constant 6.400000e+01 : f32
    %406 = vector.broadcast %cst_161 : f32 to vector<8x1xf32>
    %407 = arith.divf %405, %406 : vector<8x1xf32>
    %408 = vector.broadcast %400 : vector<8x1xf32> to vector<8x64xf32>
    %409 = arith.subf %396, %408 : vector<8x64xf32>
    %cst_162 = arith.constant 9.99999997E-7 : f32
    %410 = vector.broadcast %cst_162 : f32 to vector<8x1xf32>
    %411 = arith.addf %407, %410 : vector<8x1xf32>
    %412 = math.rsqrt %411 : vector<8x1xf32>
    %413 = vector.broadcast %412 : vector<8x1xf32> to vector<8x64xf32>
    %414 = arith.mulf %409, %413 : vector<8x64xf32>
    %415 = vector.broadcast %241 : vector<1x64xf32> to vector<8x64xf32>
    %416 = arith.mulf %414, %415 : vector<8x64xf32>
    %417 = vector.broadcast %243 : vector<1x64xf32> to vector<8x64xf32>
    %418 = arith.addf %416, %417 : vector<8x64xf32>
    %c1_163 = arith.constant 1 : index
    %c0_164 = arith.constant 0 : index
    %c0_165 = arith.constant 0 : index
    %419 = vector.load %arg7[%c1_163, %c0_164, %c0_165] : memref<2x64x256xbf16, #tpu.memory_space<vmem>>, vector<1x64x256xbf16>
    %420 = vector.shape_cast %419 : vector<1x64x256xbf16> to vector<64x256xbf16>
    %421 = arith.truncf %418 : vector<8x64xf32> to vector<8x64xbf16>
    %cst_166 = arith.constant dense<0.000000e+00> : vector<8x256xf32>
    %422 = tpu.matmul %421, %420, %cst_166 {dimension_numbers = #tpu.dot_dimension_numbers<[1], [0], [0], [1], [0, 0, 1, 1], [], []>} : vector<8x64xbf16>, vector<64x256xbf16>, vector<8x256xf32> -> vector<8x256xf32>
    %423 = vector.broadcast %245 : vector<1x256xf32> to vector<8x256xf32>
    %424 = arith.addf %422, %423 : vector<8x256xf32>
    %425 = arith.mulf %424, %424 : vector<8x256xf32>
    %426 = arith.mulf %424, %425 : vector<8x256xf32>
    %cst_167 = arith.constant 4.471500e-02 : f32
    %427 = vector.broadcast %cst_167 : f32 to vector<8x256xf32>
    %428 = arith.mulf %427, %426 : vector<8x256xf32>
    %429 = arith.addf %424, %428 : vector<8x256xf32>
    %cst_168 = arith.constant 0.797884583 : f32
    %430 = vector.broadcast %cst_168 : f32 to vector<8x256xf32>
    %431 = arith.mulf %430, %429 : vector<8x256xf32>
    %432 = math.tanh %431 : vector<8x256xf32>
    %cst_169 = arith.constant 1.000000e+00 : f32
    %433 = vector.broadcast %cst_169 : f32 to vector<8x256xf32>
    %434 = arith.addf %433, %432 : vector<8x256xf32>
    %cst_170 = arith.constant 5.000000e-01 : f32
    %435 = vector.broadcast %cst_170 : f32 to vector<8x256xf32>
    %436 = arith.mulf %435, %434 : vector<8x256xf32>
    %437 = arith.mulf %424, %436 : vector<8x256xf32>
    %c1_171 = arith.constant 1 : index
    %c0_172 = arith.constant 0 : index
    %c0_173 = arith.constant 0 : index
    %438 = vector.load %arg8[%c1_171, %c0_172, %c0_173] : memref<2x256x64xbf16, #tpu.memory_space<vmem>>, vector<1x256x64xbf16>
    %439 = vector.shape_cast %438 : vector<1x256x64xbf16> to vector<256x64xbf16>
    %440 = arith.truncf %437 : vector<8x256xf32> to vector<8x256xbf16>
    %cst_174 = arith.constant dense<0.000000e+00> : vector<8x64xf32>
    %441 = tpu.matmul %440, %439, %cst_174 {dimension_numbers = #tpu.dot_dimension_numbers<[1], [0], [0], [1], [0, 0, 1, 1], [], []>} : vector<8x256xbf16>, vector<256x64xbf16>, vector<8x64xf32> -> vector<8x64xf32>
    %442 = vector.broadcast %247 : vector<1x64xf32> to vector<8x64xf32>
    %443 = arith.addf %441, %442 : vector<8x64xf32>
    %444 = arith.addf %443, %396 : vector<8x64xf32>
    %cst_175 = arith.constant dense<0.000000e+00> : vector<8xf32>
    %445 = vector.multi_reduction <add>, %444, %cst_175 [1] : vector<8x64xf32> to vector<8xf32>
    %446 = vector.shape_cast %445 : vector<8xf32> to vector<8x1xf32>
    %cst_176 = arith.constant 6.400000e+01 : f32
    %447 = vector.broadcast %cst_176 : f32 to vector<8x1xf32>
    %448 = arith.divf %446, %447 : vector<8x1xf32>
    %449 = vector.broadcast %448 : vector<8x1xf32> to vector<8x64xf32>
    %450 = arith.subf %444, %449 : vector<8x64xf32>
    %451 = arith.mulf %450, %450 : vector<8x64xf32>
    %cst_177 = arith.constant dense<0.000000e+00> : vector<8xf32>
    %452 = vector.multi_reduction <add>, %451, %cst_177 [1] : vector<8x64xf32> to vector<8xf32>
    %453 = vector.shape_cast %452 : vector<8xf32> to vector<8x1xf32>
    %cst_178 = arith.constant 6.400000e+01 : f32
    %454 = vector.broadcast %cst_178 : f32 to vector<8x1xf32>
    %455 = arith.divf %453, %454 : vector<8x1xf32>
    %456 = vector.broadcast %448 : vector<8x1xf32> to vector<8x64xf32>
    %457 = arith.subf %444, %456 : vector<8x64xf32>
    %cst_179 = arith.constant 9.99999997E-7 : f32
    %458 = vector.broadcast %cst_179 : f32 to vector<8x1xf32>
    %459 = arith.addf %455, %458 : vector<8x1xf32>
    %460 = math.rsqrt %459 : vector<8x1xf32>
    %461 = vector.broadcast %460 : vector<8x1xf32> to vector<8x64xf32>
    %462 = arith.mulf %457, %461 : vector<8x64xf32>
    %463 = vector.broadcast %1 : vector<1x64xf32> to vector<8x64xf32>
    %464 = arith.mulf %462, %463 : vector<8x64xf32>
    %465 = vector.broadcast %2 : vector<1x64xf32> to vector<8x64xf32>
    %466 = arith.addf %464, %465 : vector<8x64xf32>
    %c0_180 = arith.constant 0 : index
    %c0_181 = arith.constant 0 : index
    %467 = vector.load %arg9[%c0_180, %c0_181] : memref<64x128xbf16, #tpu.memory_space<vmem>>, vector<64x128xbf16>
    %468 = arith.truncf %466 : vector<8x64xf32> to vector<8x64xbf16>
    %cst_182 = arith.constant dense<0.000000e+00> : vector<8x128xf32>
    %469 = tpu.matmul %468, %467, %cst_182 {dimension_numbers = #tpu.dot_dimension_numbers<[1], [0], [0], [1], [0, 0, 1, 1], [], []>} : vector<8x64xbf16>, vector<64x128xbf16>, vector<8x128xf32> -> vector<8x128xf32>
    %470 = vector.broadcast %3 : vector<1x128xf32> to vector<8x128xf32>
    %471 = arith.addf %469, %470 : vector<8x128xf32>
    %c0_183 = arith.constant 0 : index
    %c0_184 = arith.constant 0 : index
    %c0_185 = arith.constant 0 : index
    %472 = vector.load %arg10[%c0_183, %c0_184, %c0_185] : memref<1x8x128xf32, #tpu.memory_space<vmem>>, vector<1x8x128xf32>
    %473 = vector.shape_cast %472 : vector<1x8x128xf32> to vector<8x128xf32>
    %474 = vector.shape_cast %471 : vector<8x128xf32> to vector<1x8x128xf32>
    tpu.vector_store %arg10[%c0_183, %c0_184, %c0_185], %474 {strides = array<i32>} : memref<1x8x128xf32, #tpu.memory_space<vmem>>, vector<1x8x128xf32>,
    return
  }
  func.func @transform_0(%arg0: i32) -> (i32, i32, i32) {
    %c0_i32 = arith.constant 0 : i32
    %c0_i32_0 = arith.constant 0 : i32
    %c0_i32_1 = arith.constant 0 : i32
    return %arg0, %c0_i32, %c0_i32_0 : i32, i32, i32
  }
  func.func @transform_1(%arg0: i32) -> (i32, i32) {
    %c0_i32 = arith.constant 0 : i32
    %c0_i32_0 = arith.constant 0 : i32
    %c0_i32_1 = arith.constant 0 : i32
    return %c0_i32, %c0_i32_0 : i32, i32
  }
  func.func @transform_2(%arg0: i32) -> (i32, i32) {
    %c0_i32 = arith.constant 0 : i32
    %c0_i32_0 = arith.constant 0 : i32
    %c0_i32_1 = arith.constant 0 : i32
    return %c0_i32, %c0_i32_0 : i32, i32
  }
  func.func @transform_3(%arg0: i32) -> (i32, i32, i32) {
    %c0_i32 = arith.constant 0 : i32
    %c0_i32_0 = arith.constant 0 : i32
    %c0_i32_1 = arith.constant 0 : i32
    %c0_i32_2 = arith.constant 0 : i32
    return %c0_i32, %c0_i32_0, %c0_i32_1 : i32, i32, i32
  }
  func.func @transform_4(%arg0: i32) -> (i32, i32, i32) {
    %c0_i32 = arith.constant 0 : i32
    %c0_i32_0 = arith.constant 0 : i32
    %c0_i32_1 = arith.constant 0 : i32
    %c0_i32_2 = arith.constant 0 : i32
    return %c0_i32, %c0_i32_0, %c0_i32_1 : i32, i32, i32
  }
  func.func @transform_5(%arg0: i32) -> (i32, i32, i32) {
    %c0_i32 = arith.constant 0 : i32
    %c0_i32_0 = arith.constant 0 : i32
    %c0_i32_1 = arith.constant 0 : i32
    %c0_i32_2 = arith.constant 0 : i32
    return %c0_i32, %c0_i32_0, %c0_i32_1 : i32, i32, i32
  }
  func.func @transform_6(%arg0: i32) -> (i32, i32, i32) {
    %c0_i32 = arith.constant 0 : i32
    %c0_i32_0 = arith.constant 0 : i32
    %c0_i32_1 = arith.constant 0 : i32
    %c0_i32_2 = arith.constant 0 : i32
    return %c0_i32, %c0_i32_0, %c0_i32_1 : i32, i32, i32
  }
  func.func @transform_7(%arg0: i32) -> (i32, i32, i32) {
    %c0_i32 = arith.constant 0 : i32
    %c0_i32_0 = arith.constant 0 : i32
    %c0_i32_1 = arith.constant 0 : i32
    %c0_i32_2 = arith.constant 0 : i32
    return %c0_i32, %c0_i32_0, %c0_i32_1 : i32, i32, i32
  }
  func.func @transform_8(%arg0: i32) -> (i32, i32) {
    %c0_i32 = arith.constant 0 : i32
    %c0_i32_0 = arith.constant 0 : i32
    %c0_i32_1 = arith.constant 0 : i32
    return %c0_i32, %c0_i32_0 : i32, i32
  }
  func.func @transform_9(%arg0: i32) -> (i32, i32, i32) {
    %c0_i32 = arith.constant 0 : i32
    %c0_i32_0 = arith.constant 0 : i32
    %c0_i32_1 = arith.constant 0 : i32
    return %arg0, %c0_i32, %c0_i32_0 : i32, i32, i32
  }
}

</mosaic_0001>

<bundles_post_ra>
// kernel: squeeze.1
= control target key start
LH: loop header
LB: loop body
LE: loop exit
PB: predicated region body
PF: predicated region fallthrough
CT: control target
= control target key end

     0   :  { %s42_s8 = smov 120   ;;  %vm7_vm0 = vcmask 64512   ;;  %s43_s11 = smov 96   ;;  %s78_s0 = inlined_call_operand.vmem [shape: f32[2,40], index: 0, kind: input, shape index: {}]   ;;  %s79_s1 = inlined_call_operand.vmem [shape: f32[2,5,8], index: 1, kind: output, shape index: {}]  }
   0x1   :  { %v4_v0 = vld [vmem:[%s78_s0] sm:$0x3]  ;;  %s41_s0 = smov 104   ;;  %s44_s12 = smov 112  }
   0x2   :  { %5 = vst [vmem:[#allocation0] sm:$0x3] %v4_v0 }
   0x9   :  { %v21_v1 = vld [vmem:[#allocation0] sm:$0x3]  }
   0xa   :  { %v9_v2 = vld [vmem:[#allocation0] sm:$0x3]   ;;  %22 = vrot.lane.b32.xlu1 %v21_v1, %s41_s0 }
   0xb   :  { %10 = vrot.lane.b32.xlu0 %v9_v2, %s42_s8  ;;  %v6_v3 = vld [vmem:[#allocation0] sm:$0x3]  }
   0xc   :  { %v27_v4 = vld [vmem:[#allocation0] sm:$0x3]   ;;  %8 = vst.msk [vmem:[%s79_s1] ss:$8 sm:$0x3] %vm7_vm0, %v6_v3  }
   0xd   :  { %v15_v5 = vld [vmem:[#allocation0] sm:$0x3]  }
   0xe   :  { %28 = vrot.lane.b32.xlu1 %v27_v4, %s43_s11 }
   0xf   :  { %16 = vrot.lane.b32.xlu0 %v15_v5, %s44_s12 }
  0x7c   :  { %v23_v6 = vpop.permute.xlu1 %22  }
  0x7d   :  { %v11_v7 = vpop.permute.xlu0 %10   ;;  %35 = vst.msk [vmem:[%s79_s1 + $0x3] ss:$8 sm:$0x3] %vm7_vm0, %v23_v6  }
  0x7e   :  { %33 = vst.msk [vmem:[%s79_s1 + $0x1] ss:$8 sm:$0x3] %vm7_vm0, %v11_v7  }
  0x80   :  { %v29_v8 = vpop.permute.xlu1 %28  }
  0x81   :  { %v17_v9 = vpop.permute.xlu0 %16   ;;  %36 = vst.msk [vmem:[%s79_s1 + $0x4] ss:$8 sm:$0x3] %vm7_vm0, %v29_v8  }
  0x82   :  { %34 = vst.msk [vmem:[%s79_s1 + $0x2] ss:$8 sm:$0x3] %vm7_vm0, %v17_v9  }

// kernel: captcha_deit_forward.1
= control target key start
LH: loop header
LB: loop body
LE: loop exit
PB: predicated region body
PF: predicated region fallthrough
CT: control target
= control target key end

     0   :  { %s4047_s30 = smov 0   ;;  %s4766_s0 = inlined_call_operand.vmem [shape: f32[2,8,768], index: 0, kind: input, shape index: {}]   ;;  %s4767_s1 = inlined_call_operand.vmem [shape: bf16[768,64], index: 1, kind: input, shape index: {}]   ;;  %s4768_s2 = inlined_call_operand.vmem [shape: f32[16,128], index: 2, kind: input, shape index: {}]   ;;  %s4769_s3 = inlined_call_operand.vmem [shape: f32[2,8,256], index: 3, kind: input, shape index: {}]   ;;  %s4770_s4 = inlined_call_operand.vmem [shape: bf16[2,64,192], index: 4, kind: input, shape index: {}]   ;;  %s4771_s5 = inlined_call_operand.vmem [shape: bf16[2,64,64], index: 5, kind: input, shape index: {}]   ;;  %s4772_s6 = inlined_call_operand.vmem [shape: bf16[2,64,256], index: 6, kind: input, shape index: {}]   ;;  %s4773_s7 = inlined_call_operand.vmem [shape: bf16[2,256,64], index: 7, kind: input, shape index: {}]   ;;  %s4774_s8 = inlined_call_operand.vmem [shape: bf16[64,128], index: 8, kind: input, shape index: {}]   ;;  %s4775_s9 = inlined_call_operand.vmem [shape: f32[2,8,128], index: 9, kind: output, shape index: {}]  }
   0x1 LB: > { %s3220_s10 = sadd.s32 4294967295, %s3985_s30   ;;  %p3224_p0 = scmp.ge.s32.totalorder %s3985_s30, 1  ;;  %s3985_s30 = sphi %s4047_s30, %s19_s30  }
   0x2   : > { %p287_p1 = scmp.lt.s32.totalorder %s3985_s30, 3 }
   0x4   : > { %p288_p2 = pnand %p3224_p0, %p287_p1 }
   0x5   : > { %v3789_v0 = vld [vmem:[%s4767_s1 + $0x40] sm:$0xff] (!%p288_p2)   ;;  %v3793_v4 = vld [vmem:[%s4767_s1 + $0x48] sm:$0xff] (!%p288_p2)   ;;  %v3797_v8 = vld [vmem:[%s4767_s1 + $0x50] sm:$0xff] (!%p288_p2)   ;;  %p322_p3 = scmp.lt.s32.totalorder (!%p288_p2), %s3220_s10, 1  ;;  %vm867_vm0 = vcmask (!%p288_p2), 523264   ;;  %vm3989_vm1 = vmmov (!%p288_p2), 0  }
   0x6   : > { %291 = sbr.rel (%p288_p2) target bundleno = 8218 (0x201a), region = 56  ;;  %v3790_v1 = vld [vmem:[%s4767_s1 + $0xc0] sm:$0xff] (!%p288_p2)   ;;  %3451 = vmatprep.subr.bf16.mxu0 (!%p288_p2), %v3789_v0  ;;  %v3794_v5 = vld [vmem:[%s4767_s1 + $0xc8] sm:$0xff] (!%p288_p2)   ;;  %v3798_v9 = vld [vmem:[%s4767_s1 + $0xd0] sm:$0xff] (!%p288_p2)   ;;  %s3990_s22 = smov (!%p288_p2), 112   ;;  %vm993_vm2 = vcmask (!%p288_p2), 130048  }
   0x7   : > { %v3791_v2 = vld [vmem:[%s4767_s1] sm:$0xff] (!%p288_p2)   ;;  %3473 = vmatprep.subr.bf16.mxu1 (!%p288_p2), %v3790_v1  ;;  %v3795_v6 = vld [vmem:[%s4767_s1 + $0x8] sm:$0xff] (!%p288_p2)   ;;  %v3799_v10 = vld [vmem:[%s4767_s1 + $0x10] sm:$0xff] (!%p288_p2)   ;;  %s3991_s23 = smov (!%p288_p2), 64   ;;  %s3992_s24 = smov (!%p288_p2), 48   ;;  %vm1058_vm3 = vcmask (!%p288_p2), 1043456  }
   0x8   : > { %v3792_v3 = vld [vmem:[%s4767_s1 + $0x80] sm:$0xff] (!%p288_p2)   ;;  %3452 = vmatpush3.bf16.msra.mxu0 (!%p288_p2), %v3791_v2  ;;  %v3796_v7 = vld [vmem:[%s4767_s1 + $0x88] sm:$0xff] (!%p288_p2)   ;;  %v3800_v11 = vld [vmem:[%s4767_s1 + $0x90] sm:$0xff] (!%p288_p2)   ;;  %vm1042_vm5 = vcmask (!%p288_p2), 64512   ;;  %s3994_s26 = smov (!%p288_p2), 96   ;;  %s3995_s12 = smov (!%p288_p2), 80  }
   0x9   : > { %3474 = vmatpush3.bf16.msra.mxu1 (!%p288_p2), %v3792_v3  ;;  %3453 = vmatprep.subr.bf16.mxu0 (!%p288_p2), %v3793_v4  ;;  %v3801_v12 = vld [vmem:[%s4767_s1 + $0x58] sm:$0xff] (!%p288_p2)   ;;  %v3805_v16 = vld [vmem:[%s4767_s1 + $0x60] sm:$0xff] (!%p288_p2)   ;;  %v3809_v20 = vld [vmem:[%s4767_s1 + $0x68] sm:$0xff] (!%p288_p2)   ;;  %s3996_s13 = smov (!%p288_p2), 16  }
   0xa   : > { %3475 = vmatprep.subr.bf16.mxu1 (!%p288_p2), %v3794_v5  ;;  %v3802_v13 = vld [vmem:[%s4767_s1 + $0xd8] sm:$0xff] (!%p288_p2)   ;;  %v3806_v17 = vld [vmem:[%s4767_s1 + $0xe0] sm:$0xff] (!%p288_p2)   ;;  %v3810_v21 = vld [vmem:[%s4767_s1 + $0xe8] sm:$0xff] (!%p288_p2)  }
   0xb   : > { %v3803_v14 = vld [vmem:[%s4767_s1 + $0x18] sm:$0xff] (!%p288_p2)   ;;  %v3807_v18 = vld [vmem:[%s4767_s1 + $0x20] sm:$0xff] (!%p288_p2)   ;;  %v3811_v22 = vld [vmem:[%s4767_s1 + $0x28] sm:$0xff] (!%p288_p2)  }
   0xc   : > { %3454 = vmatpush3.bf16.msra.mxu0 (!%p288_p2), %v3795_v6  ;;  %v3804_v15 = vld [vmem:[%s4767_s1 + $0x98] sm:$0xff] (!%p288_p2)   ;;  %v3808_v19 = vld [vmem:[%s4767_s1 + $0xa0] sm:$0xff] (!%p288_p2)   ;;  %v3812_v23 = vld [vmem:[%s4767_s1 + $0xa8] sm:$0xff] (!%p288_p2)  }
   0xd   : > { %3476 = vmatpush3.bf16.msra.mxu1 %v3796_v7  ;;  %3455 = vmatprep.subr.bf16.mxu0 %v3797_v8  ;;  %s4777_s10 = smov (!%p322_p3, %s3220_s10), 1  ;;  %v3813_v24 = vld [vmem:[%s4767_s1 + $0x70] sm:$0xff]   ;;  %v3817_v28 = vld [vmem:[%s4767_s1 + $0x78] sm:$0xff]   ;;  %v3821_v40 = vld [vmem:[%s4767_s1 + $0x140] sm:$0xff]  }
   0xe   : > { %3477 = vmatprep.subr.bf16.mxu1 %v3798_v9  ;;  %v3814_v25 = vld [vmem:[%s4767_s1 + $0xf0] sm:$0xff]   ;;  %s3770_s25 = smul.u32 48, %s4777_s10  ;;  %v3818_v29 = vld [vmem:[%s4767_s1 + $0xf8] sm:$0xff]   ;;  %v3822_v41 = vld [vmem:[%s4767_s1 + $0x100] sm:$0xff]  }
   0xf   : > { %v3815_v26 = vld [vmem:[%s4767_s1 + $0x30] sm:$0xff]   ;;  %v3819_v30 = vld [vmem:[%s4767_s1 + $0x38] sm:$0xff]   ;;  %v3823_v42 = vld [vmem:[%s4767_s1 + $0x148] sm:$0xff]  }
  0x10   : > { %3456 = vmatpush3.bf16.msra.mxu0 %v3799_v10  ;;  %v3816_v27 = vld [vmem:[%s4767_s1 + $0xb0] sm:$0xff]   ;;  %s4155_s17 = scalar_lea.vmem %s4766_s0, %s3770_s25  ;;  %v3820_v31 = vld [vmem:[%s4767_s1 + $0xb8] sm:$0xff]   ;;  %v3824_v43 = vld [vmem:[%s4767_s1 + $0x108] sm:$0xff]   ;;  %s3993_s25 = smov 32  }
  0x11   : > { %3478 = vmatpush3.bf16.msra.mxu1 %v3800_v11  ;;  %3457 = vmatprep.subr.bf16.mxu0 %v3801_v12  ;;  %v341_v32 = vld [vmem:[%s4155_s17 + $0x8] sm:$0xff]  ;;  %v343_v33 = vld [vmem:[%s4155_s17 + $0x18] sm:$0xff]  ;;  %v340_v34 = vld [vmem:[%s4155_s17] sm:$0xff] }
  0x12   : > { %3479 = vmatprep.subr.bf16.mxu1 %v3802_v13  ;;  %v443_v35 = vpack.c.bf16 %v341_v32, %v341_v32  ;;  %v445_v36 = vpack.c.bf16 %v343_v33, %v343_v33  ;;  %v442_v37 = vpack.c.bf16 %v340_v34, %v340_v34  ;;  %v342_v38 = vld [vmem:[%s4155_s17 + $0x10] sm:$0xff]  ;;  %v3827_v46 = vld [vmem:[%s4767_s1 + $0x158] sm:$0xff]   ;;  %v3829_v48 = vld [vmem:[%s4767_s1 + $0x160] sm:$0xff]  }
  0x13   : > { %v444_v39 = vpack.c.bf16 %v342_v38, %v342_v38  ;;  %v3825_v44 = vld [vmem:[%s4767_s1 + $0x150] sm:$0xff]   ;;  %v3828_v47 = vld [vmem:[%s4767_s1 + $0x118] sm:$0xff]   ;;  %v3830_v49 = vld [vmem:[%s4767_s1 + $0x120] sm:$0xff]  }
  0x14   : > { %3458 = vmatpush3.bf16.msra.mxu0 %v3803_v14  ;;  %768 = vmatprep.mubr.bf16.mxu0 %v443_v35  ;;  %v3826_v45 = vld [vmem:[%s4767_s1 + $0x110] sm:$0xff]   ;;  %v3831_v50 = vld [vmem:[%s4767_s1 + $0x168] sm:$0xff]   ;;  %v3835_v56 = vld [vmem:[%s4767_s1 + $0x178] sm:$0xff]  }
  0x15   : > { %3480 = vmatpush3.bf16.msra.mxu1 %v3804_v15  ;;  %3459 = vmatprep.subr.bf16.mxu0 %v3805_v16  ;;  %v345_v51 = vld [vmem:[%s4155_s17 + $0x28] sm:$0xff]  ;;  %v3833_v54 = vld [vmem:[%s4767_s1 + $0x170] sm:$0xff]   ;;  %v3836_v57 = vld [vmem:[%s4767_s1 + $0x138] sm:$0xff]  }
  0x16   : > { %3481 = vmatprep.subr.bf16.mxu1 %v3806_v17  ;;  %808 = vmatprep.mubr.bf16.mxu1 %v445_v36  ;;  %v447_v52 = vpack.c.bf16 %v345_v51, %v345_v51  ;;  %v3832_v53 = vld [vmem:[%s4767_s1 + $0x128] sm:$0xff]   ;;  %v3834_v55 = vld [vmem:[%s4767_s1 + $0x130] sm:$0xff]   ;;  %v344_v58 = vld [vmem:[%s4155_s17 + $0x20] sm:$0xff] }
  0x17   : > { %v446_v59 = vpack.c.bf16 %v344_v58, %v344_v58  ;;  %v332_v12 = vld [vmem:[%s4768_s2] sm:$0xff] }
  0x18   : > { %3460 = vmatpush3.bf16.msra.mxu0 %v3807_v18  ;;  %v857_v35 = vld [vmem:[%s4769_s3] ss:$0 sm:$0xff] }
  0x19   : > { %3482 = vmatpush3.bf16.msra.mxu1 %v3808_v19  ;;  %3461 = vmatprep.subr.bf16.mxu0 %v3809_v20 }
  0x1a   : > { %3483 = vmatprep.subr.bf16.mxu1 %v3810_v21  ;;  %v3839_v21 = vld [vmem:[%s4770_s4 + $0x4] ss:$8 sps:$4 sm:$0xff]  }
  0x1c   : > { %3462 = vmatpush3.bf16.msra.mxu0 %v3811_v22  ;;  %v3837_v22 = vld [vmem:[%s4770_s4] ss:$8 sps:$4 sm:$0xff]  }
  0x1d   : > { %3484 = vmatpush3.bf16.msra.mxu1 %v3812_v23  ;;  %3463 = vmatprep.subr.bf16.mxu0 %v3813_v24  ;;  %v3842_v23 = vld [vmem:[%s4770_s4 + $0x14] ss:$8 sps:$4 sm:$0xff]   ;;  %v3840_v24 = vld [vmem:[%s4770_s4 + $0x10] ss:$8 sps:$4 sm:$0xff]  }
  0x1e   : > { %3485 = vmatprep.subr.bf16.mxu1 %v3814_v25  ;;  %v3845_v25 = vld [vmem:[%s4770_s4 + $0x24] ss:$8 sps:$4 sm:$0xff]  }
  0x20   : > { %3464 = vmatpush3.bf16.msra.mxu0 %v3815_v26  ;;  %v3843_v26 = vld [vmem:[%s4770_s4 + $0x20] ss:$8 sps:$4 sm:$0xff]  }
  0x21   : > { %3486 = vmatpush3.bf16.msra.mxu1 %v3816_v27  ;;  %3465 = vmatprep.subr.bf16.mxu0 %v3817_v28  ;;  %v3848_v27 = vld [vmem:[%s4770_s4 + $0x34] ss:$8 sps:$4 sm:$0xff]   ;;  %v3846_v28 = vld [vmem:[%s4770_s4 + $0x30] ss:$8 sps:$4 sm:$0xff]  }
  0x22   : > { %3487 = vmatprep.subr.bf16.mxu1 %v3818_v29  ;;  %v3987_v29 = vmov 0  }
  0x24   : > { %3466 = vmatpush3.bf16.msra.mxu0 %v3819_v30  ;;  %v3988_v30 = vmov 0.0  }
  0x25   : > { %3488 = vmatpush3.bf16.msra.mxu1 %v3820_v31  ;;  %3495 = vmatprep.subr.bf16.mxu0 %v3821_v40 }
  0x26   : > { %947 = vmatprep.subr.bf16.mxu1 %v3839_v21 }
  0x27   : > { %769 = vmatmul.mubr.bf16.vlgmr.msra.gmra.mrb[0].mxu0 %v442_v37  ;;  %v858_v37 = vld [vmem:[%s4769_s3 + $0x1] ss:$0 sm:$0xff] }
  0x28   : > { %809 = vmatmul.mubr.bf16.vlgmr.msra.gmra.mrb[0].mxu1 %v444_v39  ;;  %3496 = vmatpush3.bf16.msra.mxu0 %v3822_v41  ;;  %v336_v41 = vlaneseq }
  0x29   : > { %3497 = vmatprep.subr.bf16.mxu0 %v3823_v42  ;;  %848 = vmatprep.mubr.bf16.mxu0 %v447_v52 }
  0x2a   : > { %948 = vmatpush1.bf16.msra.mxu1 %v3837_v22  ;;  %979 = vmatprep.mubr.bf16.mxu1 %v3987_v29  ;;  %v895_v42 = vshrl.u32 %v336_v41, 7 }
  0x2b   : > { %949 = vmatprep.subr.bf16.mxu1 %v3842_v23 }
  0x2c   : > { %3498 = vmatpush3.bf16.msra.mxu0 %v3824_v43  ;;  %v4260_v43 = vsub.s32 0, %v895_v42  ;;  %v4278_v52 = vsub.s32 1, %v895_v42 }
  0x2d   : > { %3499 = vmatprep.subr.bf16.mxu0 %v3825_v44  ;;  %v3275_v44 = vld [vmem:[%s4769_s3 + $0x2] ss:$8 sm:$0x3] }
  0x2e   : > { %950 = vmatpush1.bf16.msra.mxu1 %v3840_v24 }
  0x2f   : > { %951 = vmatprep.subr.bf16.mxu1 %v3845_v25 }
  0x30   : > { %3500 = vmatpush3.bf16.msra.mxu0 %v3826_v45  ;;  %v897_v45 = vrot.slane %v3275_v44, %v4260_v43 }
  0x31   : > { %3501 = vmatprep.subr.bf16.mxu0 %v3827_v46 }
  0x32   : > { %952 = vmatpush1.bf16.msra.mxu1 %v3843_v26 }
  0x33   : > { %953 = vmatprep.subr.bf16.mxu1 %v3848_v27 }
  0x34   : > { %3502 = vmatpush3.bf16.msra.mxu0 %v3828_v47 }
  0x35   : > { %3503 = vmatprep.subr.bf16.mxu0 %v3829_v48 }
  0x36   : > { %954 = vmatpush1.bf16.msra.mxu1 %v3846_v28 }
  0x37   : > { %3614 = vmatprep.subr.bf16.mxu1 %v3988_v30 }
  0x38   : > { %3504 = vmatpush3.bf16.msra.mxu0 %v3830_v49 }
  0x39   : > { %3505 = vmatprep.subr.bf16.mxu0 %v3831_v50 }
  0x3c   : > { %3506 = vmatpush3.bf16.msra.mxu0 %v3832_v53  ;;  %v901_v53 = vrot.slane %v3275_v44, %v4278_v52 }
  0x3d   : > { %3507 = vmatprep.subr.bf16.mxu0 %v3833_v54 }
  0x40   : > { %3508 = vmatpush3.bf16.msra.mxu0 %v3834_v55 }
  0x41   : > { %3509 = vmatprep.subr.bf16.mxu0 %v3835_v56 }
  0x44   : > { %3510 = vmatpush3.bf16.msra.mxu0 %v3836_v57 }
  0x45   : > { %3626 = vmatprep.subr.bf16.mxu0 %v3988_v30 }
  0x47   : > { %849 = vmatmul.mubr.bf16.vlgmr.msra.gmra.mrb[4].mxu0 %v446_v59 }
  0x48   : > { %3628 = vmatprep.mubr.msk.bf16.mxu0 %vm3989_vm1, %v3988_v30 }
  0xfa   : > { %v3467_v60 = vpop.f32.mrb[0].mxu0 }
  0xfb   : > { %v3489_v61 = vpop.f32.mrb[0].mxu1  ;;  %v3468_v62 = vpop.f32.mrb[1].mxu0 }
  0xfc   : > { %v3490_v63 = vpop.f32.mrb[1].mxu1  ;;  %v3469_v0 = vadd.f32 %v3468_v62, %v3467_v60  ;;  %v3470_v2 = vpop.f32.mrb[2].mxu0  ;;  %v337_v62 = vand.u32 127, %v336_v41 }
  0xfd   : > { %v3491_v1 = vadd.f32 %v3490_v63, %v3489_v61  ;;  %v3492_v3 = vpop.f32.mrb[2].mxu1  ;;  %v3471_v4 = vpop.f32.mrb[3].mxu0 }
  0xfe   : > { %v3493_v5 = vpop.f32.mrb[3].mxu1  ;;  %vm338_vm4 = vcmp.ge.s32.totalorder %v337_v62, 5 }
  0xff   : > { %v811_v6 = vadd.f32 %v3491_v1, %v3469_v0  ;;  %v4298_v63 = vsel %vm338_vm4, -1e+30, %v3988_v30 }
 0x11a   : > { %v3511_v7 = vpop.f32.mrb[4].mxu0 }
 0x11b   : > { %v3512_v8 = vpop.f32.mrb[5].mxu0 }
 0x11c   : > { %v3513_v9 = vadd.f32 %v3512_v8, %v3511_v7  ;;  %v3514_v10 = vpop.f32.mrb[6].mxu0 }
 0x11d   : > { %v3515_v11 = vpop.f32.mrb[7].mxu0 }
 0x11e   : > { %v851_v13 = vadd.f32 %v3513_v9, %v811_v6 }
 0x120   : > { %v4220_v14 = vadd.f32 %v851_v13, %v332_v12 }
 0x122   : > { %v868_v15 = vsel %vm867_vm0, %v4220_v14, 0.0 }
 0x123   : > { %869 = vadd.xlane.f32.xlu0 %v868_v15 }
 0x1b0   : > { %v870_v16 = vpop.xlane.xlu0 %869 }
 0x1b1   : > { %v872_v17 = vmul.f32 0.015625, %v870_v16 }
 0x1b3   : > { %v873_v18 = vsub.f32 %v4220_v14, %v872_v17 }
 0x1b5   : > { %v874_v19 = vmul.f32 %v873_v18, %v873_v18 }
 0x1b7   : > { %v875_v20 = vsel %vm867_vm0, %v874_v19, 0.0 }
 0x1b8   : > { %876 = vadd.xlane.f32.xlu0 %v875_v20 }
 0x245   : > { %v877_v31 = vpop.xlane.xlu0 %876 }
 0x246   : > { %v878_v32 = vmul.f32 0.015625, %v877_v31 }
 0x248   : > { %v879_v33 = vadd.f32 1e-06, %v878_v32 }
 0x24a   : > { %3929 = vrsqrt.f32 %v879_v33 }
 0x254   : > { %v3930_v34 = vpop.eup %3929 }
 0x255   : > { %v881_v36 = vmul.f32 %v3930_v34, %v873_v18 }
 0x257   : > { %v882_v38 = vmul.f32 %v881_v36, %v857_v35 }
 0x259   : > { %v883_v39 = vadd.f32 %v882_v38, %v858_v37  ;;  %v3849_v37 = vld [vmem:[%s4771_s5] sm:$0xff]   ;;  %v3850_v38 = vld [vmem:[%s4771_s5 + $0x8] sm:$0xff]  }
 0x25b   : > { %v892_v40 = vpack.c.bf16 %v883_v39, %v883_v39 }
 0x25d   : > { %3285 = vmatmul.mubr.msk.bf16.vlgmr.msra.gmra.mrb[4].mxu1 %vm867_vm0, %v892_v40 }
 0x25e   : > { %3616 = vmatprep.mubr.msk.bf16.mxu1 %vm3989_vm1, %v3988_v30 }
 0x330   : > { %v981_v46 = vpop.f32.mrb[4].mxu1 }
 0x331   : > { %v982_v47 = vadd.f32 %v981_v46, %v897_v45  ;;  %v983_v48 = vpop.f32.mrb[5].mxu1 }
 0x332   : > { %v985_v49 = vpop.f32.mrb[6].mxu1  ;;  %v984_v55 = vadd.f32 %v983_v48, %v901_v53 }
 0x333   : > { %v4270_v50 = vpack.c.bf16 %v982_v47, %v982_v47  ;;  %v986_v51 = vpop.f32.mrb[7].mxu1 }
 0x334   : > { %v4283_v58 = vpack.c.bf16 %v984_v55, %v984_v55 }
 0x335   : > { %1105 = vrot.lane.b32.xlu0 %v4270_v50, %s3990_s22  ;;  %991 = vrot.lane.b32.xlu1 %v4270_v50, %s3991_s23 }
 0x336   : > { %v1060_v60 = vsel %vm1058_vm3, %v4283_v58, 0 }
 0x339   : > { %1107 = vrot.lane.b32.xlu1 %v4270_v50, %s3992_s24 }
 0x3a7   : > { %v992_v54 = vpop.permute.xlu1 %991  ;;  %v1106_v61 = vpop.permute.xlu0 %1105 }
 0x3a8   : > { %v998_v56 = vsel %vm993_vm2, %v992_v54, 0 }
 0x3a9   : > { %3615 = vmatpush3.bf16.xpose.msra.mxu1 %v998_v56 }
 0x3aa   : > { %3620 = vmatprep.subr.bf16.mxu1 %v3988_v30 }
 0x3ab   : > { %v1108_v57 = vpop.permute.xlu1 %1107 }
 0x3ac   : > { %v1113_v59 = vsel %vm993_vm2, %v1108_v57, 0 }
 0x3ad   : > { %3627 = vmatpush3.bf16.xpose.msra.mxu0 %v1113_v59 }
 0x3ae   : > { %3638 = vmatprep.subr.bf16.mxu0 %v3988_v30 }
 0x3b0   : > { %3617 = vmatmul.mubr.msk.bf16.vlgmr.msra.gmra.mrb[8].mxu1 %vm993_vm2, %v4270_v50 }
 0x3b1   : > { %3621 = vmatpush3.bf16.msra.mxu1 %v1060_v60  ;;  %3622 = vmatprep.mubr.msk.bf16.mxu1 %vm3989_vm1, %v3988_v30 }
 0x3b2   : > { %3632 = vmatprep.subr.bf16.mxu1 %v3988_v30 }
 0x3b4   : > { %3629 = vmatmul.mubr.msk.bf16.vlgmr.msra.gmra.mrb[8].mxu0 %vm993_vm2, %v1106_v61 }
 0x3b5   : > { %3640 = vmatprep.mubr.msk.bf16.mxu0 %vm3989_vm1, %v3988_v30  ;;  %3639 = vmatpush3.bf16.msra.mxu0 %v3850_v38 }
 0x3b6   : > { %3650 = vmatprep.subr.bf16.mxu0 %v3988_v30 }
 0x483   : > { %v1034_v0 = vpop.f32.mrb[8].mxu1 }
 0x484   : > { %v1040_v1 = vmul.f32 0.25, %v1034_v0  ;;  %v3618_v2 = vpop.f32.mrb[9].mxu1 }
 0x485   : > { %v1037_v3 = vpop.f32.mrb[10].mxu1 }
 0x486   : > { %v3619_v4 = vpop.f32.mrb[11].mxu1  ;;  %v1041_v5 = vadd.f32 %v1040_v1, %v4298_v63 }
 0x487   : > { %v1149_v6 = vpop.f32.mrb[8].mxu0 }
 0x488   : > { %v1155_v7 = vmul.f32 0.25, %v1149_v6  ;;  %v3630_v8 = vpop.f32.mrb[9].mxu0  ;;  %v1043_v9 = vsel %vm1042_vm5, %v1041_v5, -inf }
 0x489   : > { %1044 = vmax.xlane.f32.xlu1 %v1043_v9  ;;  %v1152_v10 = vpop.f32.mrb[10].mxu0 }
 0x48a   : > { %v3631_v11 = vpop.f32.mrb[11].mxu0  ;;  %v1156_v12 = vadd.f32 %v1155_v7, %v4298_v63 }
 0x48c   : > { %v1157_v13 = vsel %vm1042_vm5, %v1156_v12, -inf }
 0x48d   : > { %1158 = vmax.xlane.f32.xlu0 %v1157_v13 }
 0x4a3   : > { %1321 = vrot.lane.b32.xlu0 %v4270_v50, %s3993_s25 }
 0x516   : > { %v1045_v15 = vpop.xlane.xlu1 %1044 }
 0x517   : > { %v1046_v16 = vsub.f32 %v1041_v5, %v1045_v15 }
 0x519   : > { %v1047_v17 = vmul.f32 1.442695, %v1046_v16 }
 0x51a   : > { %v1159_v18 = vpop.xlane.xlu0 %1158 }
 0x51b   : > { %3931 = vpow2.f32 %v1047_v17  ;;  %v1160_v19 = vsub.f32 %v1156_v12, %v1159_v18 }
 0x51d   : > { %v1161_v20 = vmul.f32 1.442695, %v1160_v19 }
 0x51e   : > { %v1322_v45 = vpop.permute.xlu0 %1321 }
 0x51f   : > { %3933 = vpow2.f32 %v1161_v20  ;;  %v1327_v51 = vsel %vm993_vm2, %v1322_v45, 0 }
 0x525   : > { %v3932_v21 = vpop.eup %3931 }
 0x526   : > { %v1049_v22 = vsel %vm1042_vm5, %v3932_v21, 0.0 }
 0x527   : > { %1050 = vadd.xlane.f32.xlu1 %v1049_v22 }
 0x529   : > { %v3934_v23 = vpop.eup %3933 }
 0x52a   : > { %v1163_v24 = vsel %vm1042_vm5, %v3934_v23, 0.0 }
 0x52b   : > { %1164 = vadd.xlane.f32.xlu1 %v1163_v24 }
 0x53c   : > { %1170 = vrot.lane.b32.xlu1 %v4283_v58, %s3990_s22 }
 0x540   : > { %1319 = vrot.lane.b32.xlu1 %v4270_v50, %s3994_s26 }
 0x5b4   : > { %v1051_v25 = vpop.xlane.xlu1 %1050 }
 0x5b5   : > { %3935 = vrcp.f32 %v1051_v25 }
 0x5b8   : > { %v1165_v26 = vpop.xlane.xlu1 %1164 }
 0x5b9   : > { %3937 = vrcp.f32 %v1165_v26 }
 0x5bc   : > { %v1171_v31 = vpop.permute.xlu1 %1170 }
 0x5bd   : > { %v1176_v34 = vsel %vm1058_vm3, %v1171_v31, 0 }
 0x5bf   : > { %v3936_v27 = vpop.eup %3935 }
 0x5c0   : > { %v1053_v28 = vmul.f32 %v3936_v27, %v3932_v21  ;;  %v1320_v54 = vpop.permute.xlu1 %1319 }
 0x5c2   : > { %v1054_v32 = vpack.c.bf16 %v1053_v28, %v1053_v28 }
 0x5c3   : > { %v3938_v33 = vpop.eup %3937 }
 0x5c4   : > { %3623 = vmatmul.mubr.msk.bf16.vlgmr.msra.gmra.mrb[12].mxu1 %vm1042_vm5, %v1054_v32  ;;  %v1167_v35 = vmul.f32 %v3938_v33, %v3934_v23 }
 0x5c5   : > { %3633 = vmatpush3.bf16.msra.mxu1 %v1176_v34  ;;  %3634 = vmatprep.mubr.msk.bf16.mxu1 %vm3989_vm1, %v3988_v30 }
 0x5c6   : > { %3644 = vmatprep.subr.bf16.mxu1 %v3988_v30  ;;  %v1168_v36 = vpack.c.bf16 %v1167_v35, %v1167_v35 }
 0x5cc   : > { %3635 = vmatmul.mubr.msk.bf16.vlgmr.msra.gmra.mrb[16].mxu1 %vm1042_vm5, %v1168_v36 }
 0x5cd   : > { %3646 = vmatprep.mubr.msk.bf16.mxu1 %vm3989_vm1, %v3988_v30  ;;  %3645 = vmatpush3.bf16.msra.mxu1 %v3849_v37 }
 0x5ce   : > { %3656 = vmatprep.subr.bf16.mxu1 %v3988_v30 }
 0x697   : > { %v1096_v39 = vpop.f32.mrb[12].mxu1 }
 0x698   : > { %v1104_v40 = vpack.c.bf16 %v1096_v39, %v1096_v39  ;;  %v3624_v41 = vpop.f32.mrb[13].mxu1 }
 0x699   : > { %v1099_v42 = vpop.f32.mrb[14].mxu1 }
 0x69a   : > { %v3625_v44 = vpop.f32.mrb[15].mxu1  ;;  %3647 = vmatmul.mubr.msk.bf16.vlgmr.msra.gmra.mrb[20].mxu1 %vm993_vm2, %v1104_v40 }
 0x69b   : > { %3658 = vmatprep.mubr.msk.bf16.mxu1 %vm3989_vm1, %v3988_v30 }
 0x69f   : > { %v1212_v46 = vpop.f32.mrb[16].mxu1 }
 0x6a0   : > { %v1220_v47 = vpack.c.bf16 %v1212_v46, %v1212_v46  ;;  %v3636_v48 = vpop.f32.mrb[17].mxu1  ;;  %v3852_v46 = vld [vmem:[%s4771_s5 + $0x18] sm:$0xff]  }
 0x6a1   : > { %v1215_v49 = vpop.f32.mrb[18].mxu1 }
 0x6a2   : > { %v3637_v53 = vpop.f32.mrb[19].mxu1  ;;  %3641 = vmatmul.mubr.msk.bf16.vlgmr.msra.gmra.mrb[12].mxu0 %vm993_vm2, %v1220_v47 }
 0x6a3   : > { %3651 = vmatpush3.bf16.xpose.msra.mxu0 %v1327_v51  ;;  %3652 = vmatprep.mubr.msk.bf16.mxu0 %vm3989_vm1, %v3988_v30 }
 0x6a4   : > { %3662 = vmatprep.subr.bf16.mxu0 %v3988_v30 }
 0x6aa   : > { %3653 = vmatmul.mubr.msk.bf16.vlgmr.msra.gmra.mrb[16].mxu0 %vm993_vm2, %v1320_v54 }
 0x6ab   : > { %3664 = vmatprep.mubr.msk.bf16.mxu0 %vm3989_vm1, %v3988_v30 }
 0x76d   : > { %v1313_v55 = vpop.f32.mrb[20].mxu1 }
 0x76e   : > { %v3648_v56 = vpop.f32.mrb[21].mxu1 }
 0x76f   : > { %v1316_v57 = vpop.f32.mrb[22].mxu1 }
 0x770   : > { %v3649_v59 = vpop.f32.mrb[23].mxu1 }
 0x775   : > { %v1264_v60 = vpop.f32.mrb[12].mxu0 }
 0x776   : > { %v4339_v61 = vadd.f32 %v1313_v55, %v1264_v60  ;;  %v3642_v62 = vpop.f32.mrb[13].mxu0 }
 0x777   : > { %v1267_v0 = vpop.f32.mrb[14].mxu0 }
 0x778   : > { %v3643_v1 = vpop.f32.mrb[15].mxu0 }
 0x77d   : > { %v1363_v2 = vpop.f32.mrb[16].mxu0 }
 0x77e   : > { %v1369_v3 = vmul.f32 0.25, %v1363_v2  ;;  %v3654_v4 = vpop.f32.mrb[17].mxu0 }
 0x77f   : > { %v1366_v5 = vpop.f32.mrb[18].mxu0 }
 0x780   : > { %v3655_v6 = vpop.f32.mrb[19].mxu0  ;;  %v1370_v7 = vadd.f32 %v1369_v3, %v4298_v63 }
 0x782   : > { %v1371_v8 = vsel %vm1042_vm5, %v1370_v7, -inf }
 0x783   : > { %1372 = vmax.xlane.f32.xlu1 %v1371_v8 }
 0x794   : > { %1383 = vrot.lane.b32.xlu1 %v4283_v58, %s3994_s26 }
 0x798   : > { %1484 = vrot.lane.b32.xlu1 %v4270_v50, %s3995_s12 }
 0x810   : > { %v1373_v9 = vpop.xlane.xlu1 %1372 }
 0x811   : > { %v1374_v10 = vsub.f32 %v1370_v7, %v1373_v9 }
 0x813   : > { %v1375_v11 = vmul.f32 1.442695, %v1374_v10 }
 0x814   : > { %v1384_v12 = vpop.permute.xlu1 %1383 }
 0x815   : > { %3939 = vpow2.f32 %v1375_v11  ;;  %v1389_v13 = vsel %vm1058_vm3, %v1384_v12, 0 }
 0x816   : > { %3657 = vmatpush3.bf16.msra.mxu1 %v1389_v13 }
 0x817   : > { %3668 = vmatprep.subr.bf16.mxu1 %v3988_v30 }
 0x818   : > { %v1485_v23 = vpop.permute.xlu1 %1484 }
 0x81f   : > { %v3940_v15 = vpop.eup %3939 }
 0x820   : > { %v1377_v16 = vsel %vm1042_vm5, %v3940_v15, 0.0 }
 0x821   : > { %1378 = vadd.xlane.f32.xlu0 %v1377_v16  ;;  %v3858_v16 = vld [vmem:[%s4772_s6 + $0x14] ss:$8 sps:$4 sm:$0xff]  }
 0x837   : > { %1486 = vrot.lane.b32.xlu0 %v4270_v50, %s3996_s13  ;;  %v3851_v50 = vld [vmem:[%s4771_s5 + $0x10] sm:$0xff]  }
 0x838   : > { %3663 = vmatpush3.bf16.msra.mxu0 %v3851_v50 }
 0x839   : > { %3674 = vmatprep.subr.bf16.mxu0 %v3988_v30 }
 0x8ae   : > { %v1379_v17 = vpop.xlane.xlu0 %1378 }
 0x8af   : > { %3941 = vrcp.f32 %v1379_v17  ;;  %v3856_v17 = vld [vmem:[%s4772_s6 + $0x10] ss:$8 sps:$4 sm:$0xff]  }
 0x8b2   : > { %v1487_v20 = vpop.permute.xlu0 %1486 }
 0x8b3   : > { %v1492_v22 = vsel %vm993_vm2, %v1487_v20, 0  ;;  %v3864_v20 = vld [vmem:[%s4772_s6 + $0x34] ss:$8 sps:$4 sm:$0xff]  }
 0x8b9   : > { %v3942_v18 = vpop.eup %3941 }
 0x8ba   : > { %v1381_v19 = vmul.f32 %v3942_v18, %v3940_v15  ;;  %v3855_v15 = vld [vmem:[%s4772_s6 + $0x4] ss:$8 sps:$4 sm:$0xff]  }
 0x8bb   : > { %v3861_v18 = vld [vmem:[%s4772_s6 + $0x24] ss:$8 sps:$4 sm:$0xff]  }
 0x8bc   : > { %v1382_v21 = vpack.c.bf16 %v1381_v19, %v1381_v19  ;;  %v3859_v19 = vld [vmem:[%s4772_s6 + $0x20] ss:$8 sps:$4 sm:$0xff]  }
 0x8be   : > { %3659 = vmatmul.mubr.msk.bf16.vlgmr.msra.gmra.mrb[24].mxu1 %vm1042_vm5, %v1382_v21  ;;  %v3862_v21 = vld [vmem:[%s4772_s6 + $0x30] ss:$8 sps:$4 sm:$0xff]  }
 0x8bf   : > { %3669 = vmatpush3.bf16.xpose.msra.mxu1 %v1492_v22  ;;  %3670 = vmatprep.mubr.msk.bf16.mxu1 %vm3989_vm1, %v3988_v30 }
 0x8c0   : > { %3680 = vmatprep.subr.bf16.mxu1 %v3988_v30 }
 0x8c6   : > { %3671 = vmatmul.mubr.msk.bf16.vlgmr.msra.gmra.mrb[28].mxu1 %vm993_vm2, %v1485_v23 }
 0x8c7   : > { %3682 = vmatprep.mubr.msk.bf16.mxu1 %vm3989_vm1, %v3988_v30  ;;  %3681 = vmatpush3.bf16.msra.mxu1 %v3852_v46  ;;  %v3877_v46 = vld [vmem:[%s4773_s7 + $0x70] sm:$0xff]  }
 0x991   : > { %v1425_v24 = vpop.f32.mrb[24].mxu1 }
 0x992   : > { %v1433_v25 = vpack.c.bf16 %v1425_v24, %v1425_v24  ;;  %v3660_v26 = vpop.f32.mrb[25].mxu1 }
 0x993   : > { %v1428_v27 = vpop.f32.mrb[26].mxu1 }
 0x994   : > { %v3661_v28 = vpop.f32.mrb[27].mxu1  ;;  %3665 = vmatmul.mubr.msk.bf16.vlgmr.msra.gmra.mrb[20].mxu0 %vm993_vm2, %v1433_v25  ;;  %v862_v25 = vld [vmem:[%s4769_s3 + $0x4] ss:$0 sm:$0xff]  ;;  %v863_v27 = vld [vmem:[%s4769_s3 + $0x5] ss:$0 sm:$0xff] }
 0x995   : > { %3676 = vmatprep.mubr.msk.bf16.mxu0 %vm3989_vm1, %v3988_v30 }
 0x999   : > { %v1528_v31 = vpop.f32.mrb[28].mxu1 }
 0x99a   : > { %v1534_v32 = vmul.f32 0.25, %v1528_v31  ;;  %v3672_v33 = vpop.f32.mrb[29].mxu1 }
 0x99b   : > { %v1531_v34 = vpop.f32.mrb[30].mxu1  ;;  %v3865_v33 = vld [vmem:[%s4773_s7 + $0x40] sm:$0xff]  }
 0x99c   : > { %v3673_v35 = vpop.f32.mrb[31].mxu1  ;;  %v1535_v36 = vadd.f32 %v1534_v32, %v4298_v63  ;;  %v3866_v34 = vld [vmem:[%s4773_s7] sm:$0xff]   ;;  %3541 = vmatprep.subr.bf16.mxu1 %v3865_v33 }
 0x99d   : > { %v3867_v35 = vld [vmem:[%s4773_s7 + $0x48] sm:$0xff]  }
 0x99e   : > { %v1536_v37 = vsel %vm1042_vm5, %v1535_v36, -inf }
 0x99f   : > { %1537 = vmax.xlane.f32.xlu1 %v1536_v37  ;;  %v3869_v37 = vld [vmem:[%s4773_s7 + $0x50] sm:$0xff]  }
 0x9b0   : > { %1548 = vrot.lane.b32.xlu1 %v4283_v58, %s3995_s12 }
 0xa2c   : > { %v1538_v38 = vpop.xlane.xlu1 %1537 }
 0xa2d   : > { %v1539_v39 = vsub.f32 %v1535_v36, %v1538_v38  ;;  %v3868_v36 = vld [vmem:[%s4773_s7 + $0x8] sm:$0xff]   ;;  %v3870_v38 = vld [vmem:[%s4773_s7 + $0x10] sm:$0xff]  }
 0xa2f   : > { %v1540_v40 = vmul.f32 1.442695, %v1539_v39  ;;  %v3871_v39 = vld [vmem:[%s4773_s7 + $0x58] sm:$0xff]  }
 0xa30   : > { %v1549_v41 = vpop.permute.xlu1 %1548 }
 0xa31   : > { %3943 = vpow2.f32 %v1540_v40  ;;  %v1554_v42 = vsel %vm1058_vm3, %v1549_v41, 0  ;;  %v3872_v40 = vld [vmem:[%s4773_s7 + $0x18] sm:$0xff]   ;;  %v3873_v41 = vld [vmem:[%s4773_s7 + $0x60] sm:$0xff]  }
 0xa32   : > { %3675 = vmatpush3.bf16.msra.mxu0 %v1554_v42  ;;  %v3874_v42 = vld [vmem:[%s4773_s7 + $0x20] sm:$0xff]  }
 0xa33   : > { %1729 = vmatprep.subr.bf16.mxu0 %v3855_v15 }
 0xa3b   : > { %v3944_v44 = vpop.eup %3943 }
 0xa3c   : > { %v1542_v45 = vsel %vm1042_vm5, %v3944_v44, 0.0 }
 0xa3d   : > { %1543 = vadd.xlane.f32.xlu0 %v1542_v45  ;;  %v3876_v45 = vld [vmem:[%s4773_s7 + $0x28] sm:$0xff]  }
 0xa67   : > { %v1477_v47 = vpop.f32.mrb[20].mxu0 }
 0xa68   : > { %v1483_v58 = vadd.f32 %v1477_v47, %v4339_v61  ;;  %v3666_v48 = vpop.f32.mrb[21].mxu0  ;;  %v861_v61 = vld [vmem:[%s4769_s3 + $0x3] ss:$0 sm:$0xff]  ;;  %v3878_v47 = vld [vmem:[%s4773_s7 + $0x30] sm:$0xff]  }
 0xa69   : > { %v1480_v49 = vpop.f32.mrb[22].mxu0  ;;  %v3880_v48 = vld [vmem:[%s4773_s7 + $0x38] sm:$0xff]  }
 0xa6a   : > { %v3667_v51 = vpop.f32.mrb[23].mxu0  ;;  %v3276_v49 = vld [vmem:[%s4769_s3 + $0x6] ss:$8 sm:$0x3] }
 0xa6b   : > { %v1679_v51 = vrot.slane %v3276_v49, %v4260_v43 }
 0xaca   : > { %v1544_v53 = vpop.xlane.xlu0 %1543 }
 0xacb   : > { %3945 = vrcp.f32 %v1544_v53  ;;  %v1683_v53 = vrot.slane %v3276_v49, %v4278_v52 }
 0xad5   : > { %v3946_v54 = vpop.eup %3945 }
 0xad6   : > { %v1546_v55 = vmul.f32 %v3946_v54, %v3944_v44  ;;  %v3875_v44 = vld [vmem:[%s4773_s7 + $0x68] sm:$0xff]  }
 0xad8   : > { %v1547_v56 = vpack.c.bf16 %v1546_v55, %v1546_v55 }
 0xada   : > { %3677 = vmatmul.mubr.msk.bf16.vlgmr.msra.gmra.mrb[24].mxu0 %vm1042_vm5, %v1547_v56 }
 0xadb   : > { %1761 = vmatprep.mubr.bf16.mxu0 %v3987_v29 }
 0xbad   : > { %v1590_v57 = vpop.f32.mrb[24].mxu0 }
 0xbae   : > { %v1598_v59 = vpack.c.bf16 %v1590_v57, %v1590_v57  ;;  %v3678_v60 = vpop.f32.mrb[25].mxu0 }
 0xbaf   : > { %v1593_v62 = vpop.f32.mrb[26].mxu0 }
 0xbb0   : > { %v3679_v0 = vpop.f32.mrb[27].mxu0  ;;  %3683 = vmatmul.mubr.msk.bf16.vlgmr.msra.gmra.mrb[32].mxu1 %vm993_vm2, %v1598_v59 }
 0xbb1   : > { %3542 = vmatpush3.bf16.msra.mxu1 %v3866_v34  ;;  %v3883_v34 = vld [vmem:[%s4770_s4 + $0x44] ss:$8 sps:$4 sm:$0xff]  }
 0xbb2   : > { %3543 = vmatprep.subr.bf16.mxu1 %v3867_v35  ;;  %v3886_v35 = vld [vmem:[%s4770_s4 + $0x54] ss:$8 sps:$4 sm:$0xff]  }
 0xbb5   : > { %3544 = vmatpush3.bf16.msra.mxu1 %v3868_v36  ;;  %v3884_v36 = vld [vmem:[%s4770_s4 + $0x50] ss:$8 sps:$4 sm:$0xff]  }
 0xbb6   : > { %3545 = vmatprep.subr.bf16.mxu1 %v3869_v37  ;;  %v3889_v37 = vld [vmem:[%s4770_s4 + $0x64] ss:$8 sps:$4 sm:$0xff]  }
 0xbb9   : > { %3546 = vmatpush3.bf16.msra.mxu1 %v3870_v38  ;;  %v3887_v38 = vld [vmem:[%s4770_s4 + $0x60] ss:$8 sps:$4 sm:$0xff]  }
 0xbba   : > { %3547 = vmatprep.subr.bf16.mxu1 %v3871_v39  ;;  %v3892_v39 = vld [vmem:[%s4770_s4 + $0x74] ss:$8 sps:$4 sm:$0xff]  }
 0xbbd   : > { %3548 = vmatpush3.bf16.msra.mxu1 %v3872_v40  ;;  %v3890_v40 = vld [vmem:[%s4770_s4 + $0x70] ss:$8 sps:$4 sm:$0xff]  }
 0xbbe   : > { %3549 = vmatprep.subr.bf16.mxu1 %v3873_v41 }
 0xbc1   : > { %3550 = vmatpush3.bf16.msra.mxu1 %v3874_v42 }
 0xbc2   : > { %3551 = vmatprep.subr.bf16.mxu1 %v3875_v44 }
 0xbc5   : > { %3552 = vmatpush3.bf16.msra.mxu1 %v3876_v45 }
 0xbc6   : > { %3553 = vmatprep.subr.bf16.mxu1 %v3877_v46  ;;  %v3327_v46 = vld [vmem:[%s4769_s3 + $0x10] ss:$0 sm:$0xff] }
 0xbc9   : > { %3554 = vmatpush3.bf16.msra.mxu1 %v3878_v47 }
 0xc83   : > { %v1642_v1 = vpop.f32.mrb[32].mxu1 }
 0xc84   : > { %v1648_v2 = vadd.f32 %v1642_v1, %v1483_v58  ;;  %v3684_v3 = vpop.f32.mrb[33].mxu1  ;;  %v3879_v58 = vld [vmem:[%s4773_s7 + $0x78] sm:$0xff]  }
 0xc85   : > { %v1645_v4 = vpop.f32.mrb[34].mxu1  ;;  %3555 = vmatprep.subr.bf16.mxu1 %v3879_v58  ;;  %v3328_v58 = vld [vmem:[%s4769_s3 + $0x11] ss:$0 sm:$0xff] }
 0xc86   : > { %v1649_v5 = vadd.f32 %v1648_v2, %v861_v61  ;;  %v3685_v6 = vpop.f32.mrb[35].mxu1  ;;  %3556 = vmatpush3.bf16.msra.mxu1 %v3880_v48 }
 0xc87   : > { %3692 = vmatprep.subr.bf16.mxu1 %v3988_v30 }
 0xc88   : > { %v4384_v7 = vadd.f32 %v1649_v5, %v4220_v14  ;;  %v3853_v14 = vld [vmem:[%s4772_s6] ss:$8 sps:$4 sm:$0xff]  }
 0xc89   : > { %1730 = vmatpush1.bf16.msra.mxu0 %v3853_v14 }
 0xc8a   : > { %v1651_v8 = vsel %vm867_vm0, %v4384_v7, 0.0  ;;  %1731 = vmatprep.subr.bf16.mxu0 %v3858_v16 }
 0xc8b   : > { %1652 = vadd.xlane.f32.xlu0 %v1651_v8 }
 0xc8d   : > { %1732 = vmatpush1.bf16.msra.mxu0 %v3856_v17 }
 0xc8e   : > { %1733 = vmatprep.subr.bf16.mxu0 %v3861_v18 }
 0xc91   : > { %1734 = vmatpush1.bf16.msra.mxu0 %v3859_v19 }
 0xc92   : > { %1735 = vmatprep.subr.bf16.mxu0 %v3864_v20  ;;  %v866_v20 = vld [vmem:[%s4769_s3 + $0x7] ss:$0 sm:$0xff] }
 0xc95   : > { %1736 = vmatpush1.bf16.msra.mxu0 %v3862_v21 }
 0xc96   : > { %2049 = vmatprep.subr.bf16.mxu0 %v3883_v34 }
 0xd18   : > { %v1653_v9 = vpop.xlane.xlu0 %1652 }
 0xd19   : > { %v1654_v10 = vmul.f32 0.015625, %v1653_v9 }
 0xd1b   : > { %v1655_v11 = vsub.f32 %v4384_v7, %v1654_v10 }
 0xd1d   : > { %v1656_v12 = vmul.f32 %v1655_v11, %v1655_v11 }
 0xd1f   : > { %v1657_v13 = vsel %vm867_vm0, %v1656_v12, 0.0 }
 0xd20   : > { %1658 = vadd.xlane.f32.xlu0 %v1657_v13 }
 0xdad   : > { %v1659_v22 = vpop.xlane.xlu0 %1658 }
 0xdae   : > { %v1660_v23 = vmul.f32 0.015625, %v1659_v22 }
 0xdb0   : > { %v1661_v50 = vadd.f32 1e-06, %v1660_v23 }
 0xdb2   : > { %3947 = vrsqrt.f32 %v1661_v50 }
 0xdbc   : > { %v3948_v24 = vpop.eup %3947 }
 0xdbd   : > { %v1663_v26 = vmul.f32 %v3948_v24, %v1655_v11 }
 0xdbf   : > { %v1664_v28 = vmul.f32 %v1663_v26, %v862_v25 }
 0xdc1   : > { %v1665_v31 = vadd.f32 %v1664_v28, %v863_v27 }
 0xdc3   : > { %v1674_v32 = vpack.c.bf16 %v1665_v31, %v1665_v31 }
 0xdc5   : > { %3310 = vmatmul.mubr.msk.bf16.vlgmr.msra.gmra.mrb[28].mxu0 %vm867_vm0, %v1674_v32 }
 0xdc6   : > { %2081 = vmatprep.mubr.bf16.mxu0 %v3987_v29 }
 0xe98   : > { %v1763_v54 = vpop.f32.mrb[28].mxu0 }
 0xe99   : > { %v1764_v55 = vadd.f32 %v1763_v54, %v1679_v51  ;;  %v1765_v56 = vpop.f32.mrb[29].mxu0 }
 0xe9a   : > { %v1766_v57 = vadd.f32 %v1765_v56, %v1683_v53  ;;  %v1767_v59 = vpop.f32.mrb[30].mxu0  ;;  %v3329_v53 = vld [vmem:[%s4769_s3 + $0x12] ss:$8 sm:$0x3] }
 0xe9b   : > { %v1770_v60 = vmul.f32 %v1764_v55, %v1764_v55  ;;  %v1768_v62 = vpop.f32.mrb[31].mxu0  ;;  %v1999_v54 = vrot.slane %v3329_v53, %v4260_v43 }
 0xe9c   : > { %v1771_v0 = vmul.f32 %v1766_v57, %v1766_v57 }
 0xe9d   : > { %v1772_v61 = vmul.f32 %v1770_v60, %v1764_v55 }
 0xe9e   : > { %v1773_v1 = vmul.f32 %v1771_v0, %v1766_v57 }
 0xe9f   : > { %v1774_v2 = vmul.f32 0.044715, %v1772_v61 }
 0xea0   : > { %v1775_v3 = vmul.f32 0.044715, %v1773_v1 }
 0xea1   : > { %v1776_v4 = vadd.f32 %v1774_v2, %v1764_v55 }
 0xea2   : > { %v1777_v5 = vadd.f32 %v1775_v3, %v1766_v57 }
 0xea3   : > { %v1778_v6 = vmul.f32 0.7978846, %v1776_v4 }
 0xea4   : > { %v1779_v8 = vmul.f32 0.7978846, %v1777_v5 }
 0xea5   : > { %3949 = vtanh.f32 %v1778_v6 }
 0xea6   : > { %3951 = vtanh.f32 %v1779_v8 }
 0xeaf   : > { %v3950_v9 = vpop.eup %3949 }
 0xeb0   : > { %v3952_v10 = vpop.eup %3951  ;;  %v1782_v11 = vadd.f32 1.0, %v3950_v9 }
 0xeb1   : > { %v1783_v12 = vadd.f32 1.0, %v3952_v10 }
 0xeb2   : > { %v1784_v13 = vmul.f32 0.5, %v1782_v11 }
 0xeb3   : > { %v1785_v15 = vmul.f32 0.5, %v1783_v12 }
 0xeb4   : > { %v1786_v14 = vmul.f32 %v1784_v13, %v1764_v55  ;;  %v2003_v55 = vrot.slane %v3329_v53, %v4278_v52 }
 0xeb5   : > { %v1787_v16 = vmul.f32 %v1785_v15, %v1766_v57 }
 0xeb6   : > { %v1820_v18 = vpack.c.bf16 %v1786_v14, %v1786_v14 }
 0xeb7   : > { %v1821_v17 = vpack.c.bf16 %v1787_v16, %v1787_v16 }
 0xeb9   : > { %1950 = vmatprep.mubr.bf16.mxu1 %v1821_v17 }
 0xeba   : > { %1951 = vmatmul.mubr.bf16.vlgmr.msra.gmra.mrb[36].mxu1 %v1820_v18 }
 0xebb   : > { %3694 = vmatprep.mubr.msk.bf16.mxu1 %vm3989_vm1, %v3988_v30 }
 0xf8d   : > { %v3557_v19 = vpop.f32.mrb[36].mxu1 }
 0xf8e   : > { %v3558_v21 = vpop.f32.mrb[37].mxu1 }
 0xf8f   : > { %v3559_v22 = vadd.f32 %v3558_v21, %v3557_v19  ;;  %v3560_v23 = vpop.f32.mrb[38].mxu1 }
 0xf90   : > { %v3561_v50 = vpop.f32.mrb[39].mxu1 }
 0xf91   : > { %v1953_v24 = vadd.f32 %v3559_v22, %v866_v20 }
 0xf93   : > { %v4482_v25 = vadd.f32 %v1953_v24, %v4384_v7  ;;  %v3881_v7 = vld [vmem:[%s4770_s4 + $0x40] ss:$8 sps:$4 sm:$0xff]  }
 0xf94   : > { %2050 = vmatpush1.bf16.msra.mxu0 %v3881_v7 }
 0xf95   : > { %v1970_v26 = vsel %vm867_vm0, %v4482_v25, 0.0  ;;  %2051 = vmatprep.subr.bf16.mxu0 %v3886_v35 }
 0xf96   : > { %1971 = vadd.xlane.f32.xlu0 %v1970_v26 }
 0xf98   : > { %2052 = vmatpush1.bf16.msra.mxu0 %v3884_v36 }
 0xf99   : > { %2053 = vmatprep.subr.bf16.mxu0 %v3889_v37 }
 0xf9c   : > { %2054 = vmatpush1.bf16.msra.mxu0 %v3887_v38 }
 0xf9d   : > { %2055 = vmatprep.subr.bf16.mxu0 %v3892_v39 }
 0xfa0   : > { %2056 = vmatpush1.bf16.msra.mxu0 %v3890_v40 }
 0xfa1   : > { %3686 = vmatprep.subr.bf16.mxu0 %v3988_v30 }
0x1023   : > { %v1972_v27 = vpop.xlane.xlu0 %1971 }
0x1024   : > { %v1973_v28 = vmul.f32 0.015625, %v1972_v27 }
0x1026   : > { %v1974_v31 = vsub.f32 %v4482_v25, %v1973_v28 }
0x1028   : > { %v1975_v32 = vmul.f32 %v1974_v31, %v1974_v31 }
0x102a   : > { %v1976_v33 = vsel %vm867_vm0, %v1975_v32, 0.0 }
0x102b   : > { %1977 = vadd.xlane.f32.xlu0 %v1976_v33 }
0x10b8   : > { %v1978_v41 = vpop.xlane.xlu0 %1977 }
0x10b9   : > { %v1979_v42 = vmul.f32 0.015625, %v1978_v41 }
0x10bb   : > { %v1980_v44 = vadd.f32 1e-06, %v1979_v42 }
0x10bd   : > { %3953 = vrsqrt.f32 %v1980_v44 }
0x10c7   : > { %v3954_v45 = vpop.eup %3953 }
0x10c8   : > { %v1982_v47 = vmul.f32 %v3954_v45, %v1974_v31  ;;  %v3893_v45 = vld [vmem:[%s4771_s5 + $0x20] sm:$0xff]  }
0x10ca   : > { %v1983_v48 = vmul.f32 %v3327_v46, %v1982_v47  ;;  %v3894_v46 = vld [vmem:[%s4771_s5 + $0x28] sm:$0xff]  }
0x10cc   : > { %v1984_v49 = vadd.f32 %v3328_v58, %v1983_v48 }
0x10ce   : > { %v1994_v51 = vpack.c.bf16 %v1984_v49, %v1984_v49 }
0x10d0   : > { %3351 = vmatmul.mubr.msk.bf16.vlgmr.msra.gmra.mrb[32].mxu0 %vm867_vm0, %v1994_v51 }
0x10d1   : > { %3688 = vmatprep.mubr.msk.bf16.mxu0 %vm3989_vm1, %v3988_v30 }
0x11a3   : > { %v2083_v56 = vpop.f32.mrb[32].mxu0 }
0x11a4   : > { %v2084_v57 = vadd.f32 %v2083_v56, %v1999_v54  ;;  %v2085_v59 = vpop.f32.mrb[33].mxu0 }
0x11a5   : > { %v2086_v60 = vadd.f32 %v2085_v59, %v2003_v55  ;;  %v2087_v62 = vpop.f32.mrb[34].mxu0 }
0x11a6   : > { %v4527_v0 = vpack.c.bf16 %v2084_v57, %v2084_v57  ;;  %v2088_v61 = vpop.f32.mrb[35].mxu0 }
0x11a7   : > { %v4529_v1 = vpack.c.bf16 %v2086_v60, %v2086_v60 }
0x11a8   : > { %2207 = vrot.lane.b32.xlu1 %v4527_v0, %s3992_s24  ;;  %2093 = vrot.lane.b32.xlu0 %v4527_v0, %s3991_s23  ;;  %s3226_s24 = sshll.u32 %s4777_s10, 3 }
0x11a9   : > { %v2159_v2 = vsel %vm1058_vm3, %v4529_v1, 0  ;;  %s330_s15 = scalar_lea.vmem %s4775_s9, %s3226_s24 }
0x11aa   : > { %3693 = vmatpush3.bf16.msra.mxu1 %v2159_v2 }
0x11ab   : > { %3704 = vmatprep.subr.bf16.mxu1 %v3988_v30 }
0x11ac   : > { %2205 = vrot.lane.b32.xlu1 %v4527_v0, %s3990_s22 }
0x121a   : > { %v2094_v3 = vpop.permute.xlu0 %2093  ;;  %v2208_v5 = vpop.permute.xlu1 %2207 }
0x121b   : > { %v2099_v4 = vsel %vm993_vm2, %v2094_v3, 0  ;;  %v2213_v6 = vsel %vm993_vm2, %v2208_v5, 0 }
0x121c   : > { %3687 = vmatpush3.bf16.xpose.msra.mxu0 %v2099_v4 }
0x121d   : > { %3698 = vmatprep.subr.bf16.mxu0 %v3988_v30 }
0x121e   : > { %v2206_v8 = vpop.permute.xlu1 %2205 }
0x1223   : > { %3689 = vmatmul.mubr.msk.bf16.vlgmr.msra.gmra.mrb[36].mxu0 %vm993_vm2, %v4527_v0 }
0x1224   : > { %3699 = vmatpush3.bf16.xpose.msra.mxu0 %v2213_v6  ;;  %3700 = vmatprep.mubr.msk.bf16.mxu0 %vm3989_vm1, %v3988_v30 }
0x1225   : > { %3710 = vmatprep.subr.bf16.mxu0 %v3988_v30 }
0x122b   : > { %3701 = vmatmul.mubr.msk.bf16.vlgmr.msra.gmra.mrb[40].mxu0 %vm993_vm2, %v2206_v8 }
0x122c   : > { %3712 = vmatprep.mubr.msk.bf16.mxu0 %vm3989_vm1, %v3988_v30  ;;  %3711 = vmatpush3.bf16.msra.mxu0 %v3894_v46 }
0x122d   : > { %3722 = vmatprep.subr.bf16.mxu0 %v3988_v30 }
0x12f6   : > { %v2135_v9 = vpop.f32.mrb[36].mxu0 }
0x12f7   : > { %v2141_v10 = vmul.f32 0.25, %v2135_v9  ;;  %v3690_v11 = vpop.f32.mrb[37].mxu0 }
0x12f8   : > { %v2138_v12 = vpop.f32.mrb[38].mxu0 }
0x12f9   : > { %v3691_v13 = vpop.f32.mrb[39].mxu0  ;;  %v2142_v15 = vadd.f32 %v2141_v10, %v4298_v63 }
0x12fb   : > { %v2143_v14 = vsel %vm1042_vm5, %v2142_v15, -inf }
0x12fc   : > { %2144 = vmax.xlane.f32.xlu1 %v2143_v14 }
0x12fe   : > { %v2249_v16 = vpop.f32.mrb[40].mxu0 }
0x12ff   : > { %v2255_v17 = vmul.f32 0.25, %v2249_v16  ;;  %v3702_v18 = vpop.f32.mrb[41].mxu0 }
0x1300   : > { %v2252_v19 = vpop.f32.mrb[42].mxu0 }
0x1301   : > { %v3703_v20 = vpop.f32.mrb[43].mxu0  ;;  %v2256_v21 = vadd.f32 %v2255_v17, %v4298_v63 }
0x1303   : > { %v2257_v22 = vsel %vm1042_vm5, %v2256_v21, -inf }
0x1304   : > { %2258 = vmax.xlane.f32.xlu0 %v2257_v22 }
0x131a   : > { %2421 = vrot.lane.b32.xlu0 %v4527_v0, %s3993_s25 }
0x1389   : > { %v2145_v23 = vpop.xlane.xlu1 %2144 }
0x138a   : > { %v2146_v50 = vsub.f32 %v2142_v15, %v2145_v23 }
0x138c   : > { %v2147_v24 = vmul.f32 1.442695, %v2146_v50 }
0x138e   : > { %3955 = vpow2.f32 %v2147_v24 }
0x1391   : > { %v2259_v26 = vpop.xlane.xlu0 %2258 }
0x1392   : > { %v2260_v27 = vsub.f32 %v2256_v21, %v2259_v26 }
0x1394   : > { %v2261_v28 = vmul.f32 1.442695, %v2260_v27 }
0x1395   : > { %v2422_v53 = vpop.permute.xlu0 %2421 }
0x1396   : > { %3957 = vpow2.f32 %v2261_v28  ;;  %v2427_v59 = vsel %vm993_vm2, %v2422_v53, 0 }
0x1398   : > { %v3956_v31 = vpop.eup %3955 }
0x1399   : > { %v2149_v32 = vsel %vm1042_vm5, %v3956_v31, 0.0 }
0x139a   : > { %2150 = vadd.xlane.f32.xlu1 %v2149_v32 }
0x13a0   : > { %v3958_v33 = vpop.eup %3957 }
0x13a1   : > { %v2263_v34 = vsel %vm1042_vm5, %v3958_v33, 0.0 }
0x13a2   : > { %2264 = vadd.xlane.f32.xlu1 %v2263_v34 }
0x13b3   : > { %2270 = vrot.lane.b32.xlu1 %v4529_v1, %s3990_s22 }
0x13b7   : > { %2419 = vrot.lane.b32.xlu1 %v4527_v0, %s3994_s26 }
0x1427   : > { %v2151_v7 = vpop.xlane.xlu1 %2150 }
0x1428   : > { %3959 = vrcp.f32 %v2151_v7 }
0x142f   : > { %v2265_v35 = vpop.xlane.xlu1 %2264 }
0x1430   : > { %3961 = vrcp.f32 %v2265_v35 }
0x1432   : > { %v3960_v36 = vpop.eup %3959 }
0x1433   : > { %v2153_v37 = vmul.f32 %v3960_v36, %v3956_v31  ;;  %v2271_v38 = vpop.permute.xlu1 %2270 }
0x1434   : > { %v2276_v40 = vsel %vm1058_vm3, %v2271_v38, 0 }
0x1435   : > { %v2154_v39 = vpack.c.bf16 %v2153_v37, %v2153_v37 }
0x1437   : > { %3695 = vmatmul.mubr.msk.bf16.vlgmr.msra.gmra.mrb[40].mxu1 %vm1042_vm5, %v2154_v39  ;;  %v2420_v62 = vpop.permute.xlu1 %2419 }
0x1438   : > { %3705 = vmatpush3.bf16.msra.mxu1 %v2276_v40  ;;  %3706 = vmatprep.mubr.msk.bf16.mxu1 %vm3989_vm1, %v3988_v30 }
0x1439   : > { %3716 = vmatprep.subr.bf16.mxu1 %v3988_v30 }
0x143a   : > { %v3962_v41 = vpop.eup %3961 }
0x143b   : > { %v2267_v42 = vmul.f32 %v3962_v41, %v3958_v33  ;;  %v3895_v33 = vld [vmem:[%s4771_s5 + $0x30] sm:$0xff]  }
0x143d   : > { %v2268_v44 = vpack.c.bf16 %v2267_v42, %v2267_v42 }
0x143f   : > { %3707 = vmatmul.mubr.msk.bf16.vlgmr.msra.gmra.mrb[44].mxu1 %vm1042_vm5, %v2268_v44 }
0x1440   : > { %3718 = vmatprep.mubr.msk.bf16.mxu1 %vm3989_vm1, %v3988_v30  ;;  %3717 = vmatpush3.bf16.msra.mxu1 %v3893_v45 }
0x1441   : > { %3728 = vmatprep.subr.bf16.mxu1 %v3988_v30 }
0x150a   : > { %v2195_v47 = vpop.f32.mrb[40].mxu1 }
0x150b   : > { %v2204_v58 = vpack.c.bf16 %v2195_v47, %v2195_v47  ;;  %v3696_v48 = vpop.f32.mrb[41].mxu1 }
0x150c   : > { %v2198_v49 = vpop.f32.mrb[42].mxu1 }
0x150d   : > { %v3697_v51 = vpop.f32.mrb[43].mxu1  ;;  %3719 = vmatmul.mubr.msk.bf16.vlgmr.msra.gmra.mrb[48].mxu1 %vm993_vm2, %v2204_v58 }
0x150e   : > { %3730 = vmatprep.mubr.msk.bf16.mxu1 %vm3989_vm1, %v3988_v30 }
0x1512   : > { %v2312_v54 = vpop.f32.mrb[44].mxu1 }
0x1513   : > { %v2320_v55 = vpack.c.bf16 %v2312_v54, %v2312_v54  ;;  %v3708_v56 = vpop.f32.mrb[45].mxu1 }
0x1514   : > { %v2315_v57 = vpop.f32.mrb[46].mxu1 }
0x1515   : > { %v3709_v60 = vpop.f32.mrb[47].mxu1  ;;  %3713 = vmatmul.mubr.msk.bf16.vlgmr.msra.gmra.mrb[44].mxu0 %vm993_vm2, %v2320_v55 }
0x1516   : > { %3723 = vmatpush3.bf16.xpose.msra.mxu0 %v2427_v59  ;;  %3724 = vmatprep.mubr.msk.bf16.mxu0 %vm3989_vm1, %v3988_v30 }
0x1517   : > { %3734 = vmatprep.subr.bf16.mxu0 %v3988_v30 }
0x151d   : > { %3725 = vmatmul.mubr.msk.bf16.vlgmr.msra.gmra.mrb[48].mxu0 %vm993_vm2, %v2420_v62 }
0x151e   : > { %3736 = vmatprep.mubr.msk.bf16.mxu0 %vm3989_vm1, %v3988_v30  ;;  %3735 = vmatpush3.bf16.msra.mxu0 %v3895_v33  ;;  %v3331_v33 = vld [vmem:[%s4769_s3 + $0x14] ss:$0 sm:$0xff] }
0x151f   : > { %3746 = vmatprep.subr.bf16.mxu0 %v3988_v30 }
0x15e0   : > { %v2413_v61 = vpop.f32.mrb[48].mxu1 }
0x15e1   : > { %v3720_v2 = vpop.f32.mrb[49].mxu1 }
0x15e2   : > { %v2416_v3 = vpop.f32.mrb[50].mxu1 }
0x15e3   : > { %v3721_v4 = vpop.f32.mrb[51].mxu1 }
0x15e8   : > { %v2364_v5 = vpop.f32.mrb[44].mxu0 }
0x15e9   : > { %v4590_v6 = vadd.f32 %v2413_v61, %v2364_v5  ;;  %v3714_v8 = vpop.f32.mrb[45].mxu0 }
0x15ea   : > { %v2367_v9 = vpop.f32.mrb[46].mxu0 }
0x15eb   : > { %v3715_v10 = vpop.f32.mrb[47].mxu0 }
0x15f0   : > { %v2463_v11 = vpop.f32.mrb[48].mxu0 }
0x15f1   : > { %v2469_v12 = vmul.f32 0.25, %v2463_v11  ;;  %v3726_v13 = vpop.f32.mrb[49].mxu0 }
0x15f2   : > { %v2466_v15 = vpop.f32.mrb[50].mxu0 }
0x15f3   : > { %v3727_v14 = vpop.f32.mrb[51].mxu0  ;;  %v2470_v16 = vadd.f32 %v2469_v12, %v4298_v63 }
0x15f5   : > { %v2471_v17 = vsel %vm1042_vm5, %v2470_v16, -inf }
0x15f6   : > { %2472 = vmax.xlane.f32.xlu1 %v2471_v17 }
0x1607   : > { %2586 = vrot.lane.b32.xlu1 %v4527_v0, %s3996_s13 }
0x160b   : > { %2584 = vrot.lane.b32.xlu1 %v4527_v0, %s3995_s12 }
0x1683   : > { %v2473_v18 = vpop.xlane.xlu1 %2472 }
0x1684   : > { %v2474_v19 = vsub.f32 %v2470_v16, %v2473_v18 }
0x1686   : > { %v2475_v20 = vmul.f32 1.442695, %v2474_v19 }
0x1687   : > { %v2587_v27 = vpop.permute.xlu1 %2586 }
0x1688   : > { %3963 = vpow2.f32 %v2475_v20  ;;  %v2592_v31 = vsel %vm993_vm2, %v2587_v27, 0 }
0x168b   : > { %v2585_v32 = vpop.permute.xlu1 %2584 }
0x1692   : > { %v3964_v21 = vpop.eup %3963 }
0x1693   : > { %v2477_v22 = vsel %vm1042_vm5, %v3964_v21, 0.0 }
0x1694   : > { %2478 = vadd.xlane.f32.xlu0 %v2477_v22  ;;  %v3902_v22 = vld [vmem:[%s4772_s6 + $0x54] ss:$8 sps:$4 sm:$0xff]  }
0x16aa   : > { %2483 = vrot.lane.b32.xlu0 %v4529_v1, %s3994_s26 }
0x1721   : > { %v2479_v23 = vpop.xlane.xlu0 %2478 }
0x1722   : > { %3965 = vrcp.f32 %v2479_v23  ;;  %v3900_v23 = vld [vmem:[%s4772_s6 + $0x50] ss:$8 sps:$4 sm:$0xff]  }
0x1725   : > { %v2484_v50 = vpop.permute.xlu0 %2483 }
0x1726   : > { %v2489_v24 = vsel %vm1058_vm3, %v2484_v50, 0  ;;  %v3905_v50 = vld [vmem:[%s4772_s6 + $0x64] ss:$8 sps:$4 sm:$0xff]  }
0x1727   : > { %3729 = vmatpush3.bf16.msra.mxu1 %v2489_v24  ;;  %v3903_v24 = vld [vmem:[%s4772_s6 + $0x60] ss:$8 sps:$4 sm:$0xff]  }
0x1728   : > { %3740 = vmatprep.subr.bf16.mxu1 %v3988_v30 }
0x172c   : > { %v3966_v0 = vpop.eup %3965 }
0x172d   : > { %v2481_v26 = vmul.f32 %v3966_v0, %v3964_v21  ;;  %v3899_v21 = vld [vmem:[%s4772_s6 + $0x44] ss:$8 sps:$4 sm:$0xff]   ;;  %v3908_v0 = vld [vmem:[%s4772_s6 + $0x74] ss:$8 sps:$4 sm:$0xff]  }
0x172f   : > { %v2482_v28 = vpack.c.bf16 %v2481_v26, %v2481_v26  ;;  %v3906_v26 = vld [vmem:[%s4772_s6 + $0x70] ss:$8 sps:$4 sm:$0xff]  }
0x1731   : > { %3731 = vmatmul.mubr.msk.bf16.vlgmr.msra.gmra.mrb[52].mxu1 %vm1042_vm5, %v2482_v28 }
0x1732   : > { %3741 = vmatpush3.bf16.xpose.msra.mxu1 %v2592_v31  ;;  %3742 = vmatprep.mubr.msk.bf16.mxu1 %vm3989_vm1, %v3988_v30 }
0x1733   : > { %3752 = vmatprep.subr.bf16.mxu1 %v3988_v30 }
0x1739   : > { %3743 = vmatmul.mubr.msk.bf16.vlgmr.msra.gmra.mrb[56].mxu1 %vm993_vm2, %v2585_v32 }
0x173a   : > { %3754 = vmatprep.mubr.msk.bf16.mxu1 %vm3989_vm1, %v3988_v30 }
0x1804   : > { %v2525_v34 = vpop.f32.mrb[52].mxu1 }
0x1805   : > { %v2533_v7 = vpack.c.bf16 %v2525_v34, %v2525_v34  ;;  %v3732_v35 = vpop.f32.mrb[53].mxu1 }
0x1806   : > { %v2528_v36 = vpop.f32.mrb[54].mxu1 }
0x1807   : > { %v3733_v37 = vpop.f32.mrb[55].mxu1  ;;  %3737 = vmatmul.mubr.msk.bf16.vlgmr.msra.gmra.mrb[52].mxu0 %vm993_vm2, %v2533_v7  ;;  %v3332_v7 = vld [vmem:[%s4769_s3 + $0x15] ss:$0 sm:$0xff] }
0x1808   : > { %3748 = vmatprep.mubr.msk.bf16.mxu0 %vm3989_vm1, %v3988_v30 }
0x180c   : > { %v2628_v38 = vpop.f32.mrb[56].mxu1 }
0x180d   : > { %v2634_v39 = vmul.f32 0.25, %v2628_v38  ;;  %v3744_v40 = vpop.f32.mrb[57].mxu1  ;;  %v3909_v38 = vld [vmem:[%s4773_s7 + $0xc0] sm:$0xff]  }
0x180e   : > { %v2631_v41 = vpop.f32.mrb[58].mxu1  ;;  %v3911_v40 = vld [vmem:[%s4773_s7 + $0xc8] sm:$0xff]  }
0x180f   : > { %v3745_v42 = vpop.f32.mrb[59].mxu1  ;;  %v2635_v44 = vadd.f32 %v2634_v39, %v4298_v63  ;;  %v3896_v63 = vld [vmem:[%s4771_s5 + $0x38] sm:$0xff]   ;;  %v3910_v39 = vld [vmem:[%s4773_s7 + $0x80] sm:$0xff]   ;;  %v3912_v41 = vld [vmem:[%s4773_s7 + $0x88] sm:$0xff]  }
0x1810   : > { %3753 = vmatpush3.bf16.msra.mxu1 %v3896_v63  ;;  %v3913_v42 = vld [vmem:[%s4773_s7 + $0xd0] sm:$0xff]   ;;  %v3923_v63 = vld [vmem:[%s4773_s7 + $0xf8] sm:$0xff]  }
0x1811   : > { %v2636_v45 = vsel %vm1042_vm5, %v2635_v44, -inf  ;;  %3587 = vmatprep.subr.bf16.mxu1 %v3909_v38 }
0x1812   : > { %2637 = vmax.xlane.f32.xlu0 %v2636_v45  ;;  %v3915_v45 = vld [vmem:[%s4773_s7 + $0xd8] sm:$0xff]  }
0x1828   : > { %2648 = vrot.lane.b32.xlu0 %v4529_v1, %s3995_s12 }
0x189f   : > { %v2638_v46 = vpop.xlane.xlu0 %2637 }
0x18a0   : > { %v2639_v47 = vsub.f32 %v2635_v44, %v2638_v46  ;;  %v3914_v44 = vld [vmem:[%s4773_s7 + $0x90] sm:$0xff]   ;;  %v3916_v46 = vld [vmem:[%s4773_s7 + $0x98] sm:$0xff]  }
0x18a2   : > { %v2640_v58 = vmul.f32 1.442695, %v2639_v47  ;;  %v3917_v47 = vld [vmem:[%s4773_s7 + $0xe0] sm:$0xff]  }
0x18a3   : > { %v2649_v48 = vpop.permute.xlu0 %2648 }
0x18a4   : > { %3967 = vpow2.f32 %v2640_v58  ;;  %v2654_v49 = vsel %vm1058_vm3, %v2649_v48, 0  ;;  %v3918_v58 = vld [vmem:[%s4773_s7 + $0xa0] sm:$0xff]   ;;  %v3919_v48 = vld [vmem:[%s4773_s7 + $0xe8] sm:$0xff]  }
0x18a5   : > { %3747 = vmatpush3.bf16.msra.mxu0 %v2654_v49  ;;  %v3920_v49 = vld [vmem:[%s4773_s7 + $0xa8] sm:$0xff]  }
0x18a6   : > { %2830 = vmatprep.subr.bf16.mxu0 %v3899_v21 }
0x18ae   : > { %v3968_v51 = vpop.eup %3967 }
0x18af   : > { %v2642_v53 = vsel %vm1042_vm5, %v3968_v51, 0.0 }
0x18b0   : > { %2643 = vadd.xlane.f32.xlu1 %v2642_v53  ;;  %v3922_v53 = vld [vmem:[%s4773_s7 + $0xb0] sm:$0xff]  }
0x18da   : > { %v2577_v54 = vpop.f32.mrb[52].mxu0 }
0x18db   : > { %v2583_v1 = vadd.f32 %v2577_v54, %v4590_v6  ;;  %v3738_v55 = vpop.f32.mrb[53].mxu0  ;;  %v3330_v6 = vld [vmem:[%s4769_s3 + $0x13] ss:$0 sm:$0xff]  ;;  %v3924_v54 = vld [vmem:[%s4773_s7 + $0xb8] sm:$0xff]  }
0x18dc   : > { %v2580_v56 = vpop.f32.mrb[54].mxu0 }
0x18dd   : > { %v3739_v57 = vpop.f32.mrb[55].mxu0 }
0x193d   : > { %v2644_v59 = vpop.xlane.xlu1 %2643 }
0x193e   : > { %3969 = vrcp.f32 %v2644_v59 }
0x1948   : > { %v3970_v60 = vpop.eup %3969 }
0x1949   : > { %v2646_v62 = vmul.f32 %v3970_v60, %v3968_v51  ;;  %v3921_v51 = vld [vmem:[%s4773_s7 + $0xf0] sm:$0xff]  }
0x194b   : > { %v2647_v61 = vpack.c.bf16 %v2646_v62, %v2646_v62 }
0x194d   : > { %3749 = vmatmul.mubr.msk.bf16.vlgmr.msra.gmra.mrb[56].mxu0 %vm1042_vm5, %v2647_v61 }
0x194e   : > { %2862 = vmatprep.mubr.bf16.mxu0 %v3987_v29 }
0x1a20   : > { %v2690_v2 = vpop.f32.mrb[56].mxu0 }
0x1a21   : > { %v2698_v3 = vpack.c.bf16 %v2690_v2, %v2690_v2  ;;  %v3750_v4 = vpop.f32.mrb[57].mxu0 }
0x1a22   : > { %v2693_v5 = vpop.f32.mrb[58].mxu0 }
0x1a23   : > { %v3751_v8 = vpop.f32.mrb[59].mxu0  ;;  %3755 = vmatmul.mubr.msk.bf16.vlgmr.msra.gmra.mrb[60].mxu1 %vm993_vm2, %v2698_v3 }
0x1a24   : > { %3588 = vmatpush3.bf16.msra.mxu1 %v3910_v39 }
0x1a25   : > { %3589 = vmatprep.subr.bf16.mxu1 %v3911_v40 }
0x1a28   : > { %3590 = vmatpush3.bf16.msra.mxu1 %v3912_v41 }
0x1a29   : > { %3591 = vmatprep.subr.bf16.mxu1 %v3913_v42  ;;  %v3441_v42 = vld [vmem:[%s4768_s2 + $0x8] ss:$0 sm:$0xff] }
0x1a2c   : > { %3592 = vmatpush3.bf16.msra.mxu1 %v3914_v44 }
0x1a2d   : > { %3593 = vmatprep.subr.bf16.mxu1 %v3915_v45  ;;  %v3442_v45 = vld [vmem:[%s4768_s2 + $0x9] ss:$0 sm:$0xff] }
0x1a30   : > { %3594 = vmatpush3.bf16.msra.mxu1 %v3916_v46 }
0x1a31   : > { %3595 = vmatprep.subr.bf16.mxu1 %v3917_v47 }
0x1a34   : > { %3596 = vmatpush3.bf16.msra.mxu1 %v3918_v58 }
0x1a35   : > { %3597 = vmatprep.subr.bf16.mxu1 %v3919_v48 }
0x1a38   : > { %3598 = vmatpush3.bf16.msra.mxu1 %v3920_v49 }
0x1a39   : > { %3599 = vmatprep.subr.bf16.mxu1 %v3921_v51 }
0x1a3c   : > { %3600 = vmatpush3.bf16.msra.mxu1 %v3922_v53 }
0x1a3d   : > { %3601 = vmatprep.subr.bf16.mxu1 %v3923_v63 }
0x1a40   : > { %3602 = vmatpush3.bf16.msra.mxu1 %v3924_v54 }
0x1af6   : > { %v2742_v9 = vpop.f32.mrb[60].mxu1 }
0x1af7   : > { %v2748_v10 = vadd.f32 %v2742_v9, %v2583_v1  ;;  %v3756_v11 = vpop.f32.mrb[61].mxu1  ;;  %v3333_v1 = vld [vmem:[%s4769_s3 + $0x16] ss:$8 sm:$0x3] }
0x1af8   : > { %v2745_v12 = vpop.f32.mrb[62].mxu1  ;;  %v2780_v55 = vrot.slane %v3333_v1, %v4260_v43  ;;  %v2784_v56 = vrot.slane %v3333_v1, %v4278_v52 }
0x1af9   : > { %v2749_v13 = vadd.f32 %v3330_v6, %v2748_v10  ;;  %v3757_v15 = vpop.f32.mrb[63].mxu1 }
0x1afb   : > { %v4635_v14 = vadd.f32 %v2749_v13, %v4482_v25  ;;  %v3897_v25 = vld [vmem:[%s4772_s6 + $0x40] ss:$8 sps:$4 sm:$0xff]  }
0x1afc   : > { %2831 = vmatpush1.bf16.msra.mxu0 %v3897_v25 }
0x1afd   : > { %v2751_v29 = vsel %vm867_vm0, %v4635_v14, 0.0  ;;  %2832 = vmatprep.subr.bf16.mxu0 %v3902_v22  ;;  %v3334_v22 = vld [vmem:[%s4769_s3 + $0x17] ss:$0 sm:$0xff] }
0x1afe   : > { %2752 = vadd.xlane.f32.xlu1 %v2751_v29 }
0x1b00   : > { %2833 = vmatpush1.bf16.msra.mxu0 %v3900_v23 }
0x1b01   : > { %2834 = vmatprep.subr.bf16.mxu0 %v3905_v50 }
0x1b04   : > { %2835 = vmatpush1.bf16.msra.mxu0 %v3903_v24 }
0x1b05   : > { %2836 = vmatprep.subr.bf16.mxu0 %v3908_v0 }
0x1b08   : > { %2837 = vmatpush1.bf16.msra.mxu0 %v3906_v26 }
0x1b09   : > { %3758 = vmatprep.subr.bf16.mxu0 %v3988_v30 }
0x1b8b   : > { %v2753_v16 = vpop.xlane.xlu1 %2752 }
0x1b8c   : > { %v2754_v17 = vmul.f32 0.015625, %v2753_v16 }
0x1b8e   : > { %v2755_v18 = vsub.f32 %v4635_v14, %v2754_v17 }
0x1b90   : > { %v2756_v19 = vmul.f32 %v2755_v18, %v2755_v18 }
0x1b92   : > { %v2757_v20 = vsel %vm867_vm0, %v2756_v19, 0.0 }
0x1b93   : > { %2758 = vadd.xlane.f32.xlu1 %v2757_v20 }
0x1c20   : > { %v2759_v27 = vpop.xlane.xlu1 %2758 }
0x1c21   : > { %v2760_v28 = vmul.f32 0.015625, %v2759_v27 }
0x1c23   : > { %v2761_v31 = vadd.f32 1e-06, %v2760_v28 }
0x1c25   : > { %3971 = vrsqrt.f32 %v2761_v31 }
0x1c2f   : > { %v3972_v32 = vpop.eup %3971 }
0x1c30   : > { %v2763_v34 = vmul.f32 %v3972_v32, %v2755_v18 }
0x1c32   : > { %v2764_v35 = vmul.f32 %v3331_v33, %v2763_v34 }
0x1c34   : > { %v2765_v36 = vadd.f32 %v3332_v7, %v2764_v35  ;;  %v3925_v35 = vld [vmem:[%s4774_s8] sm:$0xff]  }
0x1c36   : > { %v2775_v37 = vpack.c.bf16 %v2765_v36, %v2765_v36  ;;  %v3927_v36 = vld [vmem:[%s4774_s8 + $0x10] sm:$0xff]  }
0x1c38   : > { %3392 = vmatmul.mubr.msk.bf16.vlgmr.msra.gmra.mrb[60].mxu0 %vm867_vm0, %v2775_v37  ;;  %v3928_v37 = vld [vmem:[%s4774_s8 + $0x18] sm:$0xff]  }
0x1c39   : > { %3766 = vmatprep.mubr.msk.bf16.mxu0 %vm3989_vm1, %v3988_v30  ;;  %3759 = vmatpush3.bf16.msra.mxu0 %v3925_v35 }
0x1c3a   : > { %3760 = vmatprep.subr.bf16.mxu0 %v3988_v30 }
0x1d0b   : > { %v2864_v57 = vpop.f32.mrb[60].mxu0 }
0x1d0c   : > { %v2865_v59 = vadd.f32 %v2864_v57, %v2780_v55  ;;  %v2866_v60 = vpop.f32.mrb[61].mxu0 }
0x1d0d   : > { %v2867_v62 = vadd.f32 %v2866_v60, %v2784_v56  ;;  %v2868_v61 = vpop.f32.mrb[62].mxu0 }
0x1d0e   : > { %v2871_v2 = vmul.f32 %v2865_v59, %v2865_v59  ;;  %v2869_v3 = vpop.f32.mrb[63].mxu0 }
0x1d0f   : > { %v2872_v4 = vmul.f32 %v2867_v62, %v2867_v62 }
0x1d10   : > { %v2873_v5 = vmul.f32 %v2871_v2, %v2865_v59 }
0x1d11   : > { %v2874_v8 = vmul.f32 %v2872_v4, %v2867_v62 }
0x1d12   : > { %v2875_v6 = vmul.f32 0.044715, %v2873_v5 }
0x1d13   : > { %v2876_v9 = vmul.f32 0.044715, %v2874_v8 }
0x1d14   : > { %v2877_v10 = vadd.f32 %v2875_v6, %v2865_v59 }
0x1d15   : > { %v2878_v11 = vadd.f32 %v2876_v9, %v2867_v62 }
0x1d16   : > { %v2879_v12 = vmul.f32 0.7978846, %v2877_v10 }
0x1d17   : > { %v2880_v13 = vmul.f32 0.7978846, %v2878_v11 }
0x1d18   : > { %3973 = vtanh.f32 %v2879_v12 }
0x1d19   : > { %3975 = vtanh.f32 %v2880_v13 }
0x1d22   : > { %v3974_v43 = vpop.eup %3973 }
0x1d23   : > { %v3976_v52 = vpop.eup %3975  ;;  %v2883_v15 = vadd.f32 1.0, %v3974_v43 }
0x1d24   : > { %v2884_v29 = vadd.f32 1.0, %v3976_v52 }
0x1d25   : > { %v2885_v16 = vmul.f32 0.5, %v2883_v15 }
0x1d26   : > { %v2886_v17 = vmul.f32 0.5, %v2884_v29 }
0x1d27   : > { %v2887_v18 = vmul.f32 %v2885_v16, %v2865_v59 }
0x1d28   : > { %v2888_v19 = vmul.f32 %v2886_v17, %v2867_v62 }
0x1d29   : > { %v2922_v21 = vpack.c.bf16 %v2887_v18, %v2887_v18 }
0x1d2a   : > { %v2923_v20 = vpack.c.bf16 %v2888_v19, %v2888_v19 }
0x1d2c   : > { %3052 = vmatprep.mubr.bf16.mxu1 %v2923_v20 }
0x1d2d   : > { %3053 = vmatmul.mubr.bf16.vlgmr.msra.gmra.mrb[64].mxu1 %v2922_v21 }
0x1e00   : > { %v3603_v25 = vpop.f32.mrb[64].mxu1 }
0x1e01   : > { %v3604_v23 = vpop.f32.mrb[65].mxu1 }
0x1e02   : > { %v3605_v50 = vadd.f32 %v3604_v23, %v3603_v25  ;;  %v3606_v24 = vpop.f32.mrb[66].mxu1 }
0x1e03   : > { %v3607_v0 = vpop.f32.mrb[67].mxu1 }
0x1e04   : > { %v3055_v26 = vadd.f32 %v3605_v50, %v3334_v22 }
0x1e06   : > { %v3060_v27 = vadd.f32 %v3055_v26, %v4635_v14  ;;  %v3926_v14 = vld [vmem:[%s4774_s8 + $0x8] sm:$0xff]  }
0x1e07   : > { %3761 = vmatpush3.bf16.msra.mxu0 %v3926_v14 }
0x1e08   : > { %v3061_v28 = vsel %vm867_vm0, %v3060_v27, 0.0  ;;  %3762 = vmatprep.subr.bf16.mxu0 %v3988_v30 }
0x1e09   : > { %3062 = vadd.xlane.f32.xlu1 %v3061_v28 }
0x1e0b   : > { %3763 = vmatpush3.bf16.msra.mxu0 %v3927_v36 }
0x1e0c   : > { %3764 = vmatprep.subr.bf16.mxu0 %v3988_v30  ;;  %v3443_v30 = vld [vmem:[%s4768_s2 + $0xa] ss:$0 sm:$0xff] }
0x1e0f   : > { %3765 = vmatpush3.bf16.msra.mxu0 %v3928_v37 }
0x1e96   : > { %v3063_v31 = vpop.xlane.xlu1 %3062 }
0x1e97   : > { %v3064_v32 = vmul.f32 0.015625, %v3063_v31 }
0x1e99   : > { %v3065_v33 = vsub.f32 %v3060_v27, %v3064_v32 }
0x1e9b   : > { %v3066_v34 = vmul.f32 %v3065_v33, %v3065_v33 }
0x1e9d   : > { %v3067_v7 = vsel %vm867_vm0, %v3066_v34, 0.0 }
0x1e9e   : > { %3068 = vadd.xlane.f32.xlu1 %v3067_v7 }
0x1f2b   : > { %v3069_v38 = vpop.xlane.xlu1 %3068 }
0x1f2c   : > { %v3070_v39 = vmul.f32 0.015625, %v3069_v38 }
0x1f2e   : > { %v3071_v40 = vadd.f32 1e-06, %v3070_v39 }
0x1f30   : > { %3977 = vrsqrt.f32 %v3071_v40 }
0x1f3a   : > { %v3978_v41 = vpop.eup %3977 }
0x1f3b   : > { %v3073_v44 = vmul.f32 %v3978_v41, %v3065_v33 }
0x1f3d   : > { %v3078_v46 = vmul.f32 %v3441_v42, %v3073_v44 }
0x1f3f   : > { %v3083_v47 = vadd.f32 %v3442_v45, %v3078_v46 }
0x1f41   : > { %v3092_v58 = vpack.c.bf16 %v3083_v47, %v3083_v47 }
0x1f43   : > { %3767 = vmatmul.mubr.msk.bf16.vlgmr.msra.gmra.mrb[64].mxu0 %vm867_vm0, %v3092_v58 }
0x2016   : > { %v3158_v48 = vpop.f32.mrb[64].mxu0 }
0x2017   : > { %v3159_v49 = vadd.f32 %v3443_v30, %v3158_v48  ;;  %v3768_v51 = vpop.f32.mrb[65].mxu0 }
0x2018   : > { %v3161_v53 = vpop.f32.mrb[66].mxu0 }
0x2019   : > { %3164 = vst [vmem:[%s330_s15] sm:$0xff] %v3159_v49  ;;  %v3769_v63 = vpop.f32.mrb[67].mxu0 }
0x201a PF: > { %s19_s30 = sadd.s32 1, %s3985_s30  }
0x201b   : > { %p16_p4 = scmp.ge.s32.totalorder %s19_s30, 4  }
0x201d   :  { %18 = sbr.rel (!%p16_p4) target bundleno = 1 (0x1), region = 95 }

</bundles_post_ra>
